<compile_context>
chip_gen: v7x
topology: tpu7x:2x2x1
jax: 0.10.0
libtpu: 0.0.40
codegen_flags: <defaults>
</compile_context>

<pallas_src>
import functools
import math

import jax
import jax.numpy as jnp
from jax import lax
from jax.experimental import pallas as pl
from jax.experimental.pallas import tpu as pltpu


CFG = dict(
    vocab_size=128,
    context_length=8,
    emb_dim=32,
    n_heads=4,
    n_layers=2,
    drop_rate=0.0,
    qkv_bias=False,
)

NEG_INF = -1e30   # finite mask value: no -inf propagation hazards


# ---------------------------------------------------------------------------
# Helpers (traced inside the Pallas kernel body AND in the pure-JAX reference)
# ---------------------------------------------------------------------------
def _layernorm(x, scale, shift, eps=1e-5):
    # matches torch: mean / biased var over last dim, then scale * norm + shift
    mean = jnp.mean(x, axis=-1, keepdims=True)
    var = jnp.mean((x - mean) ** 2, axis=-1, keepdims=True)
    return scale * ((x - mean) * lax.rsqrt(var + eps)) + shift


def _gelu(x):
    c = math.sqrt(2.0 / math.pi)
    return 0.5 * x * (1.0 + jnp.tanh(c * (x + 0.044715 * x ** 3)))


# ---------------------------------------------------------------------------
# Fused forward kernel: one grid cell = (one batch row, one layer)
# ---------------------------------------------------------------------------
def gpt_fused_kernel(x_ref, mask_ref,
                     ln1_s_ref, ln1_b_ref,
                     w_qkv_ref, b_qkv_ref, wo_ref, bo_ref,
                     ln2_s_ref, ln2_b_ref,
                     w1_ref, b1_ref, w2_ref, b2_ref,
                     lnf_s_ref, lnf_b_ref, w_out_ref,
                     o_ref, x_scr, *, num_heads):
    layer = pl.program_id(1)
    T, E = x_scr.shape
    H = num_heads
    hd = E // H

    # Load the residual stream into resident VMEM scratch at the first layer.
    @pl.when(layer == 0)
    def _():
        x_scr[...] = x_ref[0]

    x = x_scr[...]                                          # (T, E) f32

    # ----- LayerNorm 1 + fused-QKV causal multi-head attention + residual -----
    h = _layernorm(x, ln1_s_ref[0, 0], ln1_b_ref[0, 0])
    qkv = jnp.dot(h.astype(jnp.bfloat16), w_qkv_ref[0],
                  preferred_element_type=jnp.float32) + b_qkv_ref[0, 0]   # (T, 3E)
    q = qkv[:, 0 * E:1 * E] * jnp.float32(1.0 / math.sqrt(hd))  # fold softmax scale
    k = qkv[:, 1 * E:2 * E]
    v = qkv[:, 2 * E:3 * E]
    # (T, E) -> (H, T, hd): one layout change each way, no per-head loop/concat
    q = jnp.transpose(q.reshape(T, H, hd), (1, 0, 2))
    k = jnp.transpose(k.reshape(T, H, hd), (1, 0, 2))
    v = jnp.transpose(v.reshape(T, H, hd), (1, 0, 2))

    s = jnp.einsum('hqd,hkd->hqk', q, k, preferred_element_type=jnp.float32)
    s = s + mask_ref[...][None]                             # causal additive bias
    m = jnp.max(s, axis=-1, keepdims=True)
    p = jnp.exp(s - m)
    w = p * pl.reciprocal(jnp.sum(p, axis=-1, keepdims=True), approx=True)
    ctx = jnp.einsum('hqk,hkd->hqd', w, v, preferred_element_type=jnp.float32)
    ctx = jnp.transpose(ctx, (1, 0, 2)).reshape(T, E)       # heads concat (torch order)

    attn = jnp.dot(ctx.astype(jnp.bfloat16), wo_ref[0],
                   preferred_element_type=jnp.float32) + bo_ref[0, 0]
    x = x + attn                                            # residual (dropout == id)

    # ----- LayerNorm 2 + GELU MLP + residual -----
    h2 = _layernorm(x, ln2_s_ref[0, 0], ln2_b_ref[0, 0])
    ff = jnp.dot(h2.astype(jnp.bfloat16), w1_ref[0],
                 preferred_element_type=jnp.float32) + b1_ref[0, 0]
    ff = _gelu(ff)
    ff = jnp.dot(ff.astype(jnp.bfloat16), w2_ref[0],
                 preferred_element_type=jnp.float32) + b2_ref[0, 0]
    x = x + ff
    x_scr[...] = x                                          # carry to next layer

    # ----- Final LayerNorm + LM head (only after the last layer) -----
    @pl.when(layer == pl.num_programs(1) - 1)
    def _():
        xf = _layernorm(x, lnf_s_ref[0], lnf_b_ref[0])
        o_ref[0] = jnp.dot(xf.astype(jnp.bfloat16), w_out_ref[...],
                           preferred_element_type=jnp.float32)


# ---------------------------------------------------------------------------
# Wrapper: one pallas_call for the whole forward
# ---------------------------------------------------------------------------
def gpt_forward(params, in_idx, cfg):
    B, T = in_idx.shape
    E, V = cfg['emb_dim'], cfg['vocab_size']
    L, H = cfg['n_layers'], cfg['n_heads']

    # embedding gather + positional add (glue, plain JAX)
    tok = jnp.take(params['tok_emb'], in_idx, axis=0)        # (B, T, E)
    pos = params['pos_emb'][:T]                              # (T, E)
    x = (tok + pos[None]).astype(jnp.float32)
    # drop_emb: dropout with drop_rate=0.0 -> identity

    # causal additive bias, built once (constant-index block -> single DMA)
    row = jnp.arange(T)[:, None]
    col = jnp.arange(T)[None, :]
    mask_bias = jnp.where(col > row, jnp.float32(NEG_INF), jnp.float32(0.0))

    blk = params['blocks']
    args = (x, mask_bias,
            blk['ln1_s'], blk['ln1_b'],
            blk['w_qkv'], blk['b_qkv'], blk['wo'], blk['bo'],
            blk['ln2_s'], blk['ln2_b'],
            blk['w1'], blk['b1'], blk['w2'], blk['b2'],
            params['lnf_s'], params['lnf_b'], params['w_out'])

    def per_layer(r, c):
        # per-layer stacked weight: pick the l-th slice; block == full (r, c)
        return pl.BlockSpec((1, r, c), lambda b, l: (l, 0, 0))

    def shared(r, c):
        # layer-independent param (mask / final LN / LM head): constant block
        return pl.BlockSpec((r, c), lambda b, l: (0, 0))

    in_specs = [
        pl.BlockSpec((1, T, E), lambda b, l: (b, 0, 0)),     # x (per batch row)
        shared(T, T),                                        # causal bias
        per_layer(1, E), per_layer(1, E),                    # ln1 scale / shift
        per_layer(E, 3 * E), per_layer(1, 3 * E),            # fused W_qkv, b_qkv
        per_layer(E, E), per_layer(1, E),                    # out_proj W, b
        per_layer(1, E), per_layer(1, E),                    # ln2 scale / shift
        per_layer(E, 4 * E), per_layer(1, 4 * E),            # MLP W1, b1
        per_layer(4 * E, E), per_layer(1, E),                # MLP W2, b2
        shared(1, E), shared(1, E),                          # final LN scale / shift
        shared(E, V),                                        # LM head
    ]
    out_specs = pl.BlockSpec((1, T, V), lambda b, l: (b, 0, 0))

    return pl.pallas_call(
        functools.partial(gpt_fused_kernel, num_heads=H),
        out_shape=jax.ShapeDtypeStruct((B, T, V), jnp.float32),
        grid_spec=pltpu.PrefetchScalarGridSpec(
            num_scalar_prefetch=0,
            grid=(B, L),                                     # batch, layers
            in_specs=in_specs,
            out_specs=out_specs,
            scratch_shapes=[pltpu.VMEM((T, E), jnp.float32)]),  # resident residual
        compiler_params=pltpu.CompilerParams(
            dimension_semantics=("parallel", "arbitrary")),
    )(*args)


# ---------------------------------------------------------------------------
# Pure-JAX reference (identical math incl. bf16 casts; exact softmax divide)
# ---------------------------------------------------------------------------
def gpt_forward_ref(params, in_idx, cfg):
    B, T = in_idx.shape
    E = cfg['emb_dim']
    H = cfg['n_heads']
    hd = E // H
    L = cfg['n_layers']

    tok = jnp.take(params['tok_emb'], in_idx, axis=0)
    x = (tok + params['pos_emb'][:T][None]).astype(jnp.float32)

    row = jnp.arange(T)[:, None]
    col = jnp.arange(T)[None, :]
    bias = jnp.where(col > row, jnp.float32(NEG_INF), jnp.float32(0.0))

    blk = params['blocks']
    for l in range(L):
        h = _layernorm(x, blk['ln1_s'][l, 0], blk['ln1_b'][l, 0])
        qkv = jnp.einsum('bte,ef->btf', h.astype(jnp.bfloat16), blk['w_qkv'][l],
                         preferred_element_type=jnp.float32) + blk['b_qkv'][l, 0]
        q = qkv[..., 0 * E:1 * E] * jnp.float32(1.0 / math.sqrt(hd))
        k = qkv[..., 1 * E:2 * E]
        v = qkv[..., 2 * E:3 * E]
        q = q.reshape(B, T, H, hd).transpose(0, 2, 1, 3)
        k = k.reshape(B, T, H, hd).transpose(0, 2, 1, 3)
        v = v.reshape(B, T, H, hd).transpose(0, 2, 1, 3)
        s = jnp.einsum('bhqd,bhkd->bhqk', q, k,
                       preferred_element_type=jnp.float32) + bias[None, None]
        w = jax.nn.softmax(s, axis=-1)
        ctx = jnp.einsum('bhqk,bhkd->bhqd', w, v, preferred_element_type=jnp.float32)
        ctx = ctx.transpose(0, 2, 1, 3).reshape(B, T, E)
        attn = jnp.einsum('bte,ef->btf', ctx.astype(jnp.bfloat16), blk['wo'][l],
                          preferred_element_type=jnp.float32) + blk['bo'][l, 0]
        x = x + attn

        h2 = _layernorm(x, blk['ln2_s'][l, 0], blk['ln2_b'][l, 0])
        ff = jnp.einsum('bte,ef->btf', h2.astype(jnp.bfloat16), blk['w1'][l],
                        preferred_element_type=jnp.float32) + blk['b1'][l, 0]
        ff = _gelu(ff)
        ff = jnp.einsum('btf,fe->bte', ff.astype(jnp.bfloat16), blk['w2'][l],
                        preferred_element_type=jnp.float32) + blk['b2'][l, 0]
        x = x + ff

    xf = _layernorm(x, params['lnf_s'][0], params['lnf_b'][0])
    return jnp.einsum('bte,ev->btv', xf.astype(jnp.bfloat16), params['w_out'],
                      preferred_element_type=jnp.float32)


# ---------------------------------------------------------------------------
# Parameters
# ---------------------------------------------------------------------------
def init_params(cfg, key):
    E, V, C, L = cfg['emb_dim'], cfg['vocab_size'], cfg['context_length'], cfg['n_layers']
    ks = iter(jax.random.split(key, 8 + 6 * L))

    def nrm(shape, dtype=jnp.float32):
        return (0.02 * jax.random.normal(next(ks), shape, dtype=jnp.float32)).astype(dtype)

    # qkv_bias is honored: zero bias when False, trained-style bias when True.
    if cfg['qkv_bias']:
        b_qkv = nrm((L, 1, 3 * E))
    else:
        b_qkv = jnp.zeros((L, 1, 3 * E), jnp.float32)

    params = dict(
        tok_emb=nrm((V, E)),
        pos_emb=nrm((C, E)),
        lnf_s=jnp.ones((1, E), jnp.float32),
        lnf_b=jnp.zeros((1, E), jnp.float32),
        w_out=nrm((E, V), jnp.bfloat16),                     # MXU weights in bf16
        blocks=dict(
            ln1_s=jnp.ones((L, 1, E), jnp.float32),
            ln1_b=jnp.zeros((L, 1, E), jnp.float32),
            w_qkv=nrm((L, E, 3 * E), jnp.bfloat16),          # fused Q|K|V
            b_qkv=b_qkv,
            wo=nrm((L, E, E), jnp.bfloat16),
            bo=jnp.zeros((L, 1, E), jnp.float32),
            ln2_s=jnp.ones((L, 1, E), jnp.float32),
            ln2_b=jnp.zeros((L, 1, E), jnp.float32),
            w1=nrm((L, E, 4 * E), jnp.bfloat16),
            b1=jnp.zeros((L, 1, 4 * E), jnp.float32),
            w2=nrm((L, 4 * E, E), jnp.bfloat16),
            b2=jnp.zeros((L, 1, E), jnp.float32),
        ),
    )
    return params


if __name__ == "__main__":
    key = jax.random.PRNGKey(0)
    pkey, dkey = jax.random.split(key)
    params = init_params(CFG, pkey)

    B, T = 2, CFG['context_length']                          # (2, 8) token ids
    in_idx = jax.random.randint(dkey, (B, T), 0, CFG['vocab_size'], dtype=jnp.int32)

    logits = gpt_forward(params, in_idx, CFG)
    logits = jax.block_until_ready(logits)
    assert logits.shape == (B, T, CFG['vocab_size'])
    assert bool(jnp.all(jnp.isfinite(logits)))

    # correctness against a pure-JAX reference with identical mixed precision
    ref = jax.block_until_ready(gpt_forward_ref(params, in_idx, CFG))
    assert bool(jnp.allclose(logits, ref, atol=2e-3, rtol=2e-2)), (
        float(jnp.max(jnp.abs(logits - ref))))

    print("KERNEL_OK")
</pallas_src>

<mosaic_0001>
module attributes {stable_mosaic.version = 11 : i64} {
  func.func @gpt_fused_kernel(%arg0: i32, %arg1: i32, %arg2: memref<1x8x32xf32, #tpu.memory_space<vmem>>, %arg3: memref<8x8xf32, #tpu.memory_space<vmem>>, %arg4: memref<1x1x32xf32, #tpu.memory_space<vmem>>, %arg5: memref<1x1x32xf32, #tpu.memory_space<vmem>>, %arg6: memref<1x32x96xbf16, #tpu.memory_space<vmem>>, %arg7: memref<1x1x96xf32, #tpu.memory_space<vmem>>, %arg8: memref<1x32x32xbf16, #tpu.memory_space<vmem>>, %arg9: memref<1x1x32xf32, #tpu.memory_space<vmem>>, %arg10: memref<1x1x32xf32, #tpu.memory_space<vmem>>, %arg11: memref<1x1x32xf32, #tpu.memory_space<vmem>>, %arg12: memref<1x32x128xbf16, #tpu.memory_space<vmem>>, %arg13: memref<1x1x128xf32, #tpu.memory_space<vmem>>, %arg14: memref<1x128x32xbf16, #tpu.memory_space<vmem>>, %arg15: memref<1x1x32xf32, #tpu.memory_space<vmem>>, %arg16: memref<1x32xf32, #tpu.memory_space<vmem>>, %arg17: memref<1x32xf32, #tpu.memory_space<vmem>>, %arg18: memref<32x128xbf16, #tpu.memory_space<vmem>>, %arg19: memref<1x8x128xf32, #tpu.memory_space<vmem>>, %arg20: memref<8x32xf32, #tpu.memory_space<vmem>>) attributes {dimension_semantics = [#tpu.dimension_semantics<parallel>, #tpu.dimension_semantics<arbitrary>], iteration_bounds = array<i64: 2, 2>, scalar_prefetch = 0 : i64, scratch_operands = 1 : i64, tpu.core_type = #tpu.core_type<tc>, window_params = [{transform_indices = @transform_0, window_bounds = array<i64: 1, 8, 32>}, {pipeline_mode = #tpu.pipeline_mode<synchronous>, transform_indices = @transform_1, window_bounds = array<i64: 8, 8>}, {transform_indices = @transform_2, window_bounds = array<i64: 1, 1, 32>}, {transform_indices = @transform_3, window_bounds = array<i64: 1, 1, 32>}, {transform_indices = @transform_4, window_bounds = array<i64: 1, 32, 96>}, {transform_indices = @transform_5, window_bounds = array<i64: 1, 1, 96>}, {transform_indices = @transform_6, window_bounds = array<i64: 1, 32, 32>}, {transform_indices = @transform_7, window_bounds = array<i64: 1, 1, 32>}, {transform_indices = @transform_8, window_bounds = array<i64: 1, 1, 32>}, {transform_indices = @transform_9, window_bounds = array<i64: 1, 1, 32>}, {transform_indices = @transform_10, window_bounds = array<i64: 1, 32, 128>}, {transform_indices = @transform_11, window_bounds = array<i64: 1, 1, 128>}, {transform_indices = @transform_12, window_bounds = array<i64: 1, 128, 32>}, {transform_indices = @transform_13, window_bounds = array<i64: 1, 1, 32>}, {pipeline_mode = #tpu.pipeline_mode<synchronous>, transform_indices = @transform_14, window_bounds = array<i64: 1, 32>}, {pipeline_mode = #tpu.pipeline_mode<synchronous>, transform_indices = @transform_15, window_bounds = array<i64: 1, 32>}, {pipeline_mode = #tpu.pipeline_mode<synchronous>, transform_indices = @transform_16, window_bounds = array<i64: 32, 128>}, {transform_indices = @transform_17, window_bounds = array<i64: 1, 8, 128>}]} {
    %c0_i32 = arith.constant 0 : i32
    %0 = arith.cmpi eq, %arg1, %c0_i32 : i32
    %1 = arith.extui %0 : i1 to i32
    %c0_i32_0 = arith.constant 0 : i32
    %2 = arith.cmpi ne, %1, %c0_i32_0 : i32
    scf.if %2 {
      %c0_65 = arith.constant 0 : index
      %c0_66 = arith.constant 0 : index
      %c0_67 = arith.constant 0 : index
      %144 = vector.load %arg2[%c0_65, %c0_66, %c0_67] : memref<1x8x32xf32, #tpu.memory_space<vmem>>, vector<1x8x32xf32>
      %145 = vector.shape_cast %144 : vector<1x8x32xf32> to vector<8x32xf32>
      %c0_68 = arith.constant 0 : index
      %c0_69 = arith.constant 0 : index
      %146 = vector.load %arg20[%c0_68, %c0_69] : memref<8x32xf32, #tpu.memory_space<vmem>>, vector<8x32xf32>
      tpu.vector_store %arg20[%c0_68, %c0_69], %145 {strides = array<i32>} : memref<8x32xf32, #tpu.memory_space<vmem>>, vector<8x32xf32>,
    } else {
    }
    %c0 = arith.constant 0 : index
    %c0_1 = arith.constant 0 : index
    %3 = vector.load %arg20[%c0, %c0_1] : memref<8x32xf32, #tpu.memory_space<vmem>>, vector<8x32xf32>
    %c0_2 = arith.constant 0 : index
    %c0_3 = arith.constant 0 : index
    %c0_4 = arith.constant 0 : index
    %4 = vector.load %arg4[%c0_2, %c0_3, %c0_4] : memref<1x1x32xf32, #tpu.memory_space<vmem>>, vector<1x1x32xf32>
    %5 = vector.shape_cast %4 : vector<1x1x32xf32> to vector<32xf32>
    %c0_5 = arith.constant 0 : index
    %c0_6 = arith.constant 0 : index
    %c0_7 = arith.constant 0 : index
    %6 = vector.load %arg5[%c0_5, %c0_6, %c0_7] : memref<1x1x32xf32, #tpu.memory_space<vmem>>, vector<1x1x32xf32>
    %7 = vector.shape_cast %6 : vector<1x1x32xf32> to vector<32xf32>
    %cst = arith.constant dense<0.000000e+00> : vector<8xf32>
    %8 = vector.multi_reduction <add>, %3, %cst [1] : vector<8x32xf32> to vector<8xf32>
    %9 = vector.shape_cast %8 : vector<8xf32> to vector<8x1xf32>
    %cst_8 = arith.constant 3.200000e+01 : f32
    %10 = vector.broadcast %cst_8 : f32 to vector<8x1xf32>
    %11 = arith.divf %9, %10 : vector<8x1xf32>
    %12 = vector.broadcast %11 : vector<8x1xf32> to vector<8x32xf32>
    %13 = arith.subf %3, %12 : vector<8x32xf32>
    %14 = arith.mulf %13, %13 : vector<8x32xf32>
    %cst_9 = arith.constant dense<0.000000e+00> : vector<8xf32>
    %15 = vector.multi_reduction <add>, %14, %cst_9 [1] : vector<8x32xf32> to vector<8xf32>
    %16 = vector.shape_cast %15 : vector<8xf32> to vector<8x1xf32>
    %cst_10 = arith.constant 3.200000e+01 : f32
    %17 = vector.broadcast %cst_10 : f32 to vector<8x1xf32>
    %18 = arith.divf %16, %17 : vector<8x1xf32>
    %19 = vector.broadcast %11 : vector<8x1xf32> to vector<8x32xf32>
    %20 = arith.subf %3, %19 : vector<8x32xf32>
    %cst_11 = arith.constant 9.99999974E-6 : f32
    %21 = vector.broadcast %cst_11 : f32 to vector<8x1xf32>
    %22 = arith.addf %18, %21 : vector<8x1xf32>
    %23 = math.rsqrt %22 : vector<8x1xf32>
    %24 = vector.broadcast %23 : vector<8x1xf32> to vector<8x32xf32>
    %25 = arith.mulf %20, %24 : vector<8x32xf32>
    %26 = vector.shape_cast %5 : vector<32xf32> to vector<1x32xf32>
    %27 = vector.broadcast %26 : vector<1x32xf32> to vector<8x32xf32>
    %28 = arith.mulf %27, %25 : vector<8x32xf32>
    %29 = vector.shape_cast %7 : vector<32xf32> to vector<1x32xf32>
    %30 = vector.broadcast %29 : vector<1x32xf32> to vector<8x32xf32>
    %31 = arith.addf %28, %30 : vector<8x32xf32>
    %32 = arith.truncf %31 : vector<8x32xf32> to vector<8x32xbf16>
    %c0_12 = arith.constant 0 : index
    %c0_13 = arith.constant 0 : index
    %c0_14 = arith.constant 0 : index
    %33 = vector.load %arg6[%c0_12, %c0_13, %c0_14] : memref<1x32x96xbf16, #tpu.memory_space<vmem>>, vector<1x32x96xbf16>
    %34 = vector.shape_cast %33 : vector<1x32x96xbf16> to vector<32x96xbf16>
    %cst_15 = arith.constant dense<0.000000e+00> : vector<8x96xf32>
    %35 = tpu.matmul %32, %34, %cst_15 {dimension_numbers = #tpu.dot_dimension_numbers<[1], [0], [0], [1], [0, 0, 1, 1], [], []>} : vector<8x32xbf16>, vector<32x96xbf16>, vector<8x96xf32> -> vector<8x96xf32>
    %c0_16 = arith.constant 0 : index
    %c0_17 = arith.constant 0 : index
    %c0_18 = arith.constant 0 : index
    %36 = vector.load %arg7[%c0_16, %c0_17, %c0_18] : memref<1x1x96xf32, #tpu.memory_space<vmem>>, vector<1x1x96xf32>
    %37 = vector.shape_cast %36 : vector<1x1x96xf32> to vector<96xf32>
    %38 = vector.shape_cast %37 : vector<96xf32> to vector<1x96xf32>
    %39 = vector.broadcast %38 : vector<1x96xf32> to vector<8x96xf32>
    %40 = arith.addf %35, %39 : vector<8x96xf32>
    %41 = vector.extract_strided_slice %40 {offsets = [0, 0], sizes = [8, 32], strides = [1, 1]} : vector<8x96xf32> to vector<8x32xf32>
    %cst_19 = arith.constant 0.353553385 : f32
    %42 = vector.broadcast %cst_19 : f32 to vector<8x32xf32>
    %43 = arith.mulf %41, %42 : vector<8x32xf32>
    %44 = vector.extract_strided_slice %40 {offsets = [0, 32], sizes = [8, 32], strides = [1, 1]} : vector<8x96xf32> to vector<8x32xf32>
    %45 = vector.extract_strided_slice %40 {offsets = [0, 64], sizes = [8, 32], strides = [1, 1]} : vector<8x96xf32> to vector<8x32xf32>
    %46 = vector.shape_cast %43 : vector<8x32xf32> to vector<8x4x8xf32>
    %47 = tpu.transpose %46, [1, 0, 2] : vector<8x4x8xf32> -> vector<4x8x8xf32>
    %48 = vector.shape_cast %44 : vector<8x32xf32> to vector<8x4x8xf32>
    %49 = tpu.transpose %48, [1, 0, 2] : vector<8x4x8xf32> -> vector<4x8x8xf32>
    %50 = vector.shape_cast %45 : vector<8x32xf32> to vector<8x4x8xf32>
    %51 = tpu.transpose %50, [1, 0, 2] : vector<8x4x8xf32> -> vector<4x8x8xf32>
    "tpu.trace_start"() <{level = 10 : i32, message = "hqd,hkd->hqk"}> : () -> ()
    %cst_20 = arith.constant dense<0.000000e+00> : vector<4x8x8xf32>
    %52 = tpu.matmul %47, %49, %cst_20 {dimension_numbers = #tpu.dot_dimension_numbers<[2], [2], [1], [1], [0, 0, 0, 1, 1, 1], [0], [0]>} : vector<4x8x8xf32>, vector<4x8x8xf32>, vector<4x8x8xf32> -> vector<4x8x8xf32>
    "tpu.trace_stop"() : () -> ()
    %c0_21 = arith.constant 0 : index
    %c0_22 = arith.constant 0 : index
    %53 = vector.load %arg3[%c0_21, %c0_22] : memref<8x8xf32, #tpu.memory_space<vmem>>, vector<8x8xf32>
    %54 = vector.shape_cast %53 : vector<8x8xf32> to vector<1x8x8xf32>
    %55 = vector.broadcast %54 : vector<1x8x8xf32> to vector<4x8x8xf32>
    %56 = arith.addf %52, %55 : vector<4x8x8xf32>
    %cst_23 = arith.constant dense<0xFF800000> : vector<4x8xf32>
    %57 = vector.multi_reduction <maximumf>, %56, %cst_23 [2] : vector<4x8x8xf32> to vector<4x8xf32>
    %58 = vector.shape_cast %57 : vector<4x8xf32> to vector<4x8x1xf32>
    %59 = vector.broadcast %58 : vector<4x8x1xf32> to vector<4x8x8xf32>
    %60 = arith.subf %56, %59 : vector<4x8x8xf32>
    %61 = math.exp %60 : vector<4x8x8xf32>
    %cst_24 = arith.constant dense<0.000000e+00> : vector<4x8xf32>
    %62 = vector.multi_reduction <add>, %61, %cst_24 [2] : vector<4x8x8xf32> to vector<4x8xf32>
    %63 = vector.shape_cast %62 : vector<4x8xf32> to vector<4x8x1xf32>
    %64 = tpu.reciprocal %63 {approx = true} : vector<4x8x1xf32> -> vector<4x8x1xf32>
    %65 = vector.broadcast %64 : vector<4x8x1xf32> to vector<4x8x8xf32>
    %66 = arith.mulf %61, %65 : vector<4x8x8xf32>
    "tpu.trace_start"() <{level = 10 : i32, message = "hqk,hkd->hqd"}> : () -> ()
    %cst_25 = arith.constant dense<0.000000e+00> : vector<4x8x8xf32>
    %67 = tpu.matmul %66, %51, %cst_25 {dimension_numbers = #tpu.dot_dimension_numbers<[2], [1], [1], [2], [0, 0, 0, 1, 1, 2], [0], [0]>} : vector<4x8x8xf32>, vector<4x8x8xf32>, vector<4x8x8xf32> -> vector<4x8x8xf32>
    "tpu.trace_stop"() : () -> ()
    %68 = tpu.transpose %67, [1, 0, 2] : vector<4x8x8xf32> -> vector<8x4x8xf32>
    %69 = vector.shape_cast %68 : vector<8x4x8xf32> to vector<8x32xf32>
    %70 = arith.truncf %69 : vector<8x32xf32> to vector<8x32xbf16>
    %c0_26 = arith.constant 0 : index
    %c0_27 = arith.constant 0 : index
    %c0_28 = arith.constant 0 : index
    %71 = vector.load %arg8[%c0_26, %c0_27, %c0_28] : memref<1x32x32xbf16, #tpu.memory_space<vmem>>, vector<1x32x32xbf16>
    %72 = vector.shape_cast %71 : vector<1x32x32xbf16> to vector<32x32xbf16>
    %cst_29 = arith.constant dense<0.000000e+00> : vector<8x32xf32>
    %73 = tpu.matmul %70, %72, %cst_29 {dimension_numbers = #tpu.dot_dimension_numbers<[1], [0], [0], [1], [0, 0, 1, 1], [], []>} : vector<8x32xbf16>, vector<32x32xbf16>, vector<8x32xf32> -> vector<8x32xf32>
    %c0_30 = arith.constant 0 : index
    %c0_31 = arith.constant 0 : index
    %c0_32 = arith.constant 0 : index
    %74 = vector.load %arg9[%c0_30, %c0_31, %c0_32] : memref<1x1x32xf32, #tpu.memory_space<vmem>>, vector<1x1x32xf32>
    %75 = vector.shape_cast %74 : vector<1x1x32xf32> to vector<32xf32>
    %76 = vector.shape_cast %75 : vector<32xf32> to vector<1x32xf32>
    %77 = vector.broadcast %76 : vector<1x32xf32> to vector<8x32xf32>
    %78 = arith.addf %73, %77 : vector<8x32xf32>
    %79 = arith.addf %3, %78 : vector<8x32xf32>
    %c0_33 = arith.constant 0 : index
    %c0_34 = arith.constant 0 : index
    %c0_35 = arith.constant 0 : index
    %80 = vector.load %arg10[%c0_33, %c0_34, %c0_35] : memref<1x1x32xf32, #tpu.memory_space<vmem>>, vector<1x1x32xf32>
    %81 = vector.shape_cast %80 : vector<1x1x32xf32> to vector<32xf32>
    %c0_36 = arith.constant 0 : index
    %c0_37 = arith.constant 0 : index
    %c0_38 = arith.constant 0 : index
    %82 = vector.load %arg11[%c0_36, %c0_37, %c0_38] : memref<1x1x32xf32, #tpu.memory_space<vmem>>, vector<1x1x32xf32>
    %83 = vector.shape_cast %82 : vector<1x1x32xf32> to vector<32xf32>
    %cst_39 = arith.constant dense<0.000000e+00> : vector<8xf32>
    %84 = vector.multi_reduction <add>, %79, %cst_39 [1] : vector<8x32xf32> to vector<8xf32>
    %85 = vector.shape_cast %84 : vector<8xf32> to vector<8x1xf32>
    %cst_40 = arith.constant 3.200000e+01 : f32
    %86 = vector.broadcast %cst_40 : f32 to vector<8x1xf32>
    %87 = arith.divf %85, %86 : vector<8x1xf32>
    %88 = vector.broadcast %87 : vector<8x1xf32> to vector<8x32xf32>
    %89 = arith.subf %79, %88 : vector<8x32xf32>
    %90 = arith.mulf %89, %89 : vector<8x32xf32>
    %cst_41 = arith.constant dense<0.000000e+00> : vector<8xf32>
    %91 = vector.multi_reduction <add>, %90, %cst_41 [1] : vector<8x32xf32> to vector<8xf32>
    %92 = vector.shape_cast %91 : vector<8xf32> to vector<8x1xf32>
    %cst_42 = arith.constant 3.200000e+01 : f32
    %93 = vector.broadcast %cst_42 : f32 to vector<8x1xf32>
    %94 = arith.divf %92, %93 : vector<8x1xf32>
    %95 = vector.broadcast %87 : vector<8x1xf32> to vector<8x32xf32>
    %96 = arith.subf %79, %95 : vector<8x32xf32>
    %cst_43 = arith.constant 9.99999974E-6 : f32
    %97 = vector.broadcast %cst_43 : f32 to vector<8x1xf32>
    %98 = arith.addf %94, %97 : vector<8x1xf32>
    %99 = math.rsqrt %98 : vector<8x1xf32>
    %100 = vector.broadcast %99 : vector<8x1xf32> to vector<8x32xf32>
    %101 = arith.mulf %96, %100 : vector<8x32xf32>
    %102 = vector.shape_cast %81 : vector<32xf32> to vector<1x32xf32>
    %103 = vector.broadcast %102 : vector<1x32xf32> to vector<8x32xf32>
    %104 = arith.mulf %103, %101 : vector<8x32xf32>
    %105 = vector.shape_cast %83 : vector<32xf32> to vector<1x32xf32>
    %106 = vector.broadcast %105 : vector<1x32xf32> to vector<8x32xf32>
    %107 = arith.addf %104, %106 : vector<8x32xf32>
    %108 = arith.truncf %107 : vector<8x32xf32> to vector<8x32xbf16>
    %c0_44 = arith.constant 0 : index
    %c0_45 = arith.constant 0 : index
    %c0_46 = arith.constant 0 : index
    %109 = vector.load %arg12[%c0_44, %c0_45, %c0_46] : memref<1x32x128xbf16, #tpu.memory_space<vmem>>, vector<1x32x128xbf16>
    %110 = vector.shape_cast %109 : vector<1x32x128xbf16> to vector<32x128xbf16>
    %cst_47 = arith.constant dense<0.000000e+00> : vector<8x128xf32>
    %111 = tpu.matmul %108, %110, %cst_47 {dimension_numbers = #tpu.dot_dimension_numbers<[1], [0], [0], [1], [0, 0, 1, 1], [], []>} : vector<8x32xbf16>, vector<32x128xbf16>, vector<8x128xf32> -> vector<8x128xf32>
    %c0_48 = arith.constant 0 : index
    %c0_49 = arith.constant 0 : index
    %c0_50 = arith.constant 0 : index
    %112 = vector.load %arg13[%c0_48, %c0_49, %c0_50] : memref<1x1x128xf32, #tpu.memory_space<vmem>>, vector<1x1x128xf32>
    %113 = vector.shape_cast %112 : vector<1x1x128xf32> to vector<128xf32>
    %114 = vector.shape_cast %113 : vector<128xf32> to vector<1x128xf32>
    %115 = vector.broadcast %114 : vector<1x128xf32> to vector<8x128xf32>
    %116 = arith.addf %111, %115 : vector<8x128xf32>
    %cst_51 = arith.constant 5.000000e-01 : f32
    %117 = vector.broadcast %cst_51 : f32 to vector<8x128xf32>
    %118 = arith.mulf %117, %116 : vector<8x128xf32>
    %119 = arith.mulf %116, %116 : vector<8x128xf32>
    %120 = arith.mulf %116, %119 : vector<8x128xf32>
    %cst_52 = arith.constant 4.471500e-02 : f32
    %121 = vector.broadcast %cst_52 : f32 to vector<8x128xf32>
    %122 = arith.mulf %121, %120 : vector<8x128xf32>
    %123 = arith.addf %116, %122 : vector<8x128xf32>
    %cst_53 = arith.constant 0.797884583 : f32
    %124 = vector.broadcast %cst_53 : f32 to vector<8x128xf32>
    %125 = arith.mulf %124, %123 : vector<8x128xf32>
    %126 = math.tanh %125 : vector<8x128xf32>
    %cst_54 = arith.constant 1.000000e+00 : f32
    %127 = vector.broadcast %cst_54 : f32 to vector<8x128xf32>
    %128 = arith.addf %127, %126 : vector<8x128xf32>
    %129 = arith.mulf %118, %128 : vector<8x128xf32>
    %130 = arith.truncf %129 : vector<8x128xf32> to vector<8x128xbf16>
    %c0_55 = arith.constant 0 : index
    %c0_56 = arith.constant 0 : index
    %c0_57 = arith.constant 0 : index
    %131 = vector.load %arg14[%c0_55, %c0_56, %c0_57] : memref<1x128x32xbf16, #tpu.memory_space<vmem>>, vector<1x128x32xbf16>
    %132 = vector.shape_cast %131 : vector<1x128x32xbf16> to vector<128x32xbf16>
    %cst_58 = arith.constant dense<0.000000e+00> : vector<8x32xf32>
    %133 = tpu.matmul %130, %132, %cst_58 {dimension_numbers = #tpu.dot_dimension_numbers<[1], [0], [0], [1], [0, 0, 1, 1], [], []>} : vector<8x128xbf16>, vector<128x32xbf16>, vector<8x32xf32> -> vector<8x32xf32>
    %c0_59 = arith.constant 0 : index
    %c0_60 = arith.constant 0 : index
    %c0_61 = arith.constant 0 : index
    %134 = vector.load %arg15[%c0_59, %c0_60, %c0_61] : memref<1x1x32xf32, #tpu.memory_space<vmem>>, vector<1x1x32xf32>
    %135 = vector.shape_cast %134 : vector<1x1x32xf32> to vector<32xf32>
    %136 = vector.shape_cast %135 : vector<32xf32> to vector<1x32xf32>
    %137 = vector.broadcast %136 : vector<1x32xf32> to vector<8x32xf32>
    %138 = arith.addf %133, %137 : vector<8x32xf32>
    %139 = arith.addf %79, %138 : vector<8x32xf32>
    %c0_62 = arith.constant 0 : index
    %c0_63 = arith.constant 0 : index
    %140 = vector.load %arg20[%c0_62, %c0_63] : memref<8x32xf32, #tpu.memory_space<vmem>>, vector<8x32xf32>
    tpu.vector_store %arg20[%c0_62, %c0_63], %139 {strides = array<i32>} : memref<8x32xf32, #tpu.memory_space<vmem>>, vector<8x32xf32>,
    %c1_i32 = arith.constant 1 : i32
    %141 = arith.cmpi eq, %arg1, %c1_i32 : i32
    %142 = arith.extui %141 : i1 to i32
    %c0_i32_64 = arith.constant 0 : i32
    %143 = arith.cmpi ne, %142, %c0_i32_64 : i32
    scf.if %143 {
      %c0_65 = arith.constant 0 : index
      %c0_66 = arith.constant 0 : index
      %144 = vector.load %arg16[%c0_65, %c0_66] : memref<1x32xf32, #tpu.memory_space<vmem>>, vector<1x32xf32>
      %145 = vector.shape_cast %144 : vector<1x32xf32> to vector<32xf32>
      %c0_67 = arith.constant 0 : index
      %c0_68 = arith.constant 0 : index
      %146 = vector.load %arg17[%c0_67, %c0_68] : memref<1x32xf32, #tpu.memory_space<vmem>>, vector<1x32xf32>
      %147 = vector.shape_cast %146 : vector<1x32xf32> to vector<32xf32>
      %cst_69 = arith.constant dense<0.000000e+00> : vector<8xf32>
      %148 = vector.multi_reduction <add>, %139, %cst_69 [1] : vector<8x32xf32> to vector<8xf32>
      %149 = vector.shape_cast %148 : vector<8xf32> to vector<8x1xf32>
      %cst_70 = arith.constant 3.200000e+01 : f32
      %150 = vector.broadcast %cst_70 : f32 to vector<8x1xf32>
      %151 = arith.divf %149, %150 : vector<8x1xf32>
      %152 = vector.broadcast %151 : vector<8x1xf32> to vector<8x32xf32>
      %153 = arith.subf %139, %152 : vector<8x32xf32>
      %154 = arith.mulf %153, %153 : vector<8x32xf32>
      %cst_71 = arith.constant dense<0.000000e+00> : vector<8xf32>
      %155 = vector.multi_reduction <add>, %154, %cst_71 [1] : vector<8x32xf32> to vector<8xf32>
      %156 = vector.shape_cast %155 : vector<8xf32> to vector<8x1xf32>
      %cst_72 = arith.constant 3.200000e+01 : f32
      %157 = vector.broadcast %cst_72 : f32 to vector<8x1xf32>
      %158 = arith.divf %156, %157 : vector<8x1xf32>
      %159 = vector.broadcast %151 : vector<8x1xf32> to vector<8x32xf32>
      %160 = arith.subf %139, %159 : vector<8x32xf32>
      %cst_73 = arith.constant 9.99999974E-6 : f32
      %161 = vector.broadcast %cst_73 : f32 to vector<8x1xf32>
      %162 = arith.addf %158, %161 : vector<8x1xf32>
      %163 = math.rsqrt %162 : vector<8x1xf32>
      %164 = vector.broadcast %163 : vector<8x1xf32> to vector<8x32xf32>
      %165 = arith.mulf %160, %164 : vector<8x32xf32>
      %166 = vector.shape_cast %145 : vector<32xf32> to vector<1x32xf32>
      %167 = vector.broadcast %166 : vector<1x32xf32> to vector<8x32xf32>
      %168 = arith.mulf %167, %165 : vector<8x32xf32>
      %169 = vector.shape_cast %147 : vector<32xf32> to vector<1x32xf32>
      %170 = vector.broadcast %169 : vector<1x32xf32> to vector<8x32xf32>
      %171 = arith.addf %168, %170 : vector<8x32xf32>
      %172 = arith.truncf %171 : vector<8x32xf32> to vector<8x32xbf16>
      %c0_74 = arith.constant 0 : index
      %c0_75 = arith.constant 0 : index
      %173 = vector.load %arg18[%c0_74, %c0_75] : memref<32x128xbf16, #tpu.memory_space<vmem>>, vector<32x128xbf16>
      %cst_76 = arith.constant dense<0.000000e+00> : vector<8x128xf32>
      %174 = tpu.matmul %172, %173, %cst_76 {dimension_numbers = #tpu.dot_dimension_numbers<[1], [0], [0], [1], [0, 0, 1, 1], [], []>} : vector<8x32xbf16>, vector<32x128xbf16>, vector<8x128xf32> -> vector<8x128xf32>
      %c0_77 = arith.constant 0 : index
      %c0_78 = arith.constant 0 : index
      %c0_79 = arith.constant 0 : index
      %175 = vector.load %arg19[%c0_77, %c0_78, %c0_79] : memref<1x8x128xf32, #tpu.memory_space<vmem>>, vector<1x8x128xf32>
      %176 = vector.shape_cast %175 : vector<1x8x128xf32> to vector<8x128xf32>
      %177 = vector.shape_cast %174 : vector<8x128xf32> to vector<1x8x128xf32>
      tpu.vector_store %arg19[%c0_77, %c0_78, %c0_79], %177 {strides = array<i32>} : memref<1x8x128xf32, #tpu.memory_space<vmem>>, vector<1x8x128xf32>,
    } else {
    }
    return
  }
  func.func @transform_0(%arg0: i32, %arg1: i32) -> (i32, i32, i32) {
    %c0_i32 = arith.constant 0 : i32
    %c0_i32_0 = arith.constant 0 : i32
    %c0_i32_1 = arith.constant 0 : i32
    return %arg0, %c0_i32, %c0_i32_0 : i32, i32, i32
  }
  func.func @transform_1(%arg0: i32, %arg1: i32) -> (i32, i32) {
    %c0_i32 = arith.constant 0 : i32
    %c0_i32_0 = arith.constant 0 : i32
    %c0_i32_1 = arith.constant 0 : i32
    return %c0_i32, %c0_i32_0 : i32, i32
  }
  func.func @transform_2(%arg0: i32, %arg1: i32) -> (i32, i32, i32) {
    %c0_i32 = arith.constant 0 : i32
    %c0_i32_0 = arith.constant 0 : i32
    %c0_i32_1 = arith.constant 0 : i32
    return %arg1, %c0_i32, %c0_i32_0 : i32, i32, i32
  }
  func.func @transform_3(%arg0: i32, %arg1: i32) -> (i32, i32, i32) {
    %c0_i32 = arith.constant 0 : i32
    %c0_i32_0 = arith.constant 0 : i32
    %c0_i32_1 = arith.constant 0 : i32
    return %arg1, %c0_i32, %c0_i32_0 : i32, i32, i32
  }
  func.func @transform_4(%arg0: i32, %arg1: i32) -> (i32, i32, i32) {
    %c0_i32 = arith.constant 0 : i32
    %c0_i32_0 = arith.constant 0 : i32
    %c0_i32_1 = arith.constant 0 : i32
    return %arg1, %c0_i32, %c0_i32_0 : i32, i32, i32
  }
  func.func @transform_5(%arg0: i32, %arg1: i32) -> (i32, i32, i32) {
    %c0_i32 = arith.constant 0 : i32
    %c0_i32_0 = arith.constant 0 : i32
    %c0_i32_1 = arith.constant 0 : i32
    return %arg1, %c0_i32, %c0_i32_0 : i32, i32, i32
  }
  func.func @transform_6(%arg0: i32, %arg1: i32) -> (i32, i32, i32) {
    %c0_i32 = arith.constant 0 : i32
    %c0_i32_0 = arith.constant 0 : i32
    %c0_i32_1 = arith.constant 0 : i32
    return %arg1, %c0_i32, %c0_i32_0 : i32, i32, i32
  }
  func.func @transform_7(%arg0: i32, %arg1: i32) -> (i32, i32, i32) {
    %c0_i32 = arith.constant 0 : i32
    %c0_i32_0 = arith.constant 0 : i32
    %c0_i32_1 = arith.constant 0 : i32
    return %arg1, %c0_i32, %c0_i32_0 : i32, i32, i32
  }
  func.func @transform_8(%arg0: i32, %arg1: i32) -> (i32, i32, i32) {
    %c0_i32 = arith.constant 0 : i32
    %c0_i32_0 = arith.constant 0 : i32
    %c0_i32_1 = arith.constant 0 : i32
    return %arg1, %c0_i32, %c0_i32_0 : i32, i32, i32
  }
  func.func @transform_9(%arg0: i32, %arg1: i32) -> (i32, i32, i32) {
    %c0_i32 = arith.constant 0 : i32
    %c0_i32_0 = arith.constant 0 : i32
    %c0_i32_1 = arith.constant 0 : i32
    return %arg1, %c0_i32, %c0_i32_0 : i32, i32, i32
  }
  func.func @transform_10(%arg0: i32, %arg1: i32) -> (i32, i32, i32) {
    %c0_i32 = arith.constant 0 : i32
    %c0_i32_0 = arith.constant 0 : i32
    %c0_i32_1 = arith.constant 0 : i32
    return %arg1, %c0_i32, %c0_i32_0 : i32, i32, i32
  }
  func.func @transform_11(%arg0: i32, %arg1: i32) -> (i32, i32, i32) {
    %c0_i32 = arith.constant 0 : i32
    %c0_i32_0 = arith.constant 0 : i32
    %c0_i32_1 = arith.constant 0 : i32
    return %arg1, %c0_i32, %c0_i32_0 : i32, i32, i32
  }
  func.func @transform_12(%arg0: i32, %arg1: i32) -> (i32, i32, i32) {
    %c0_i32 = arith.constant 0 : i32
    %c0_i32_0 = arith.constant 0 : i32
    %c0_i32_1 = arith.constant 0 : i32
    return %arg1, %c0_i32, %c0_i32_0 : i32, i32, i32
  }
  func.func @transform_13(%arg0: i32, %arg1: i32) -> (i32, i32, i32) {
    %c0_i32 = arith.constant 0 : i32
    %c0_i32_0 = arith.constant 0 : i32
    %c0_i32_1 = arith.constant 0 : i32
    return %arg1, %c0_i32, %c0_i32_0 : i32, i32, i32
  }
  func.func @transform_14(%arg0: i32, %arg1: i32) -> (i32, i32) {
    %c0_i32 = arith.constant 0 : i32
    %c0_i32_0 = arith.constant 0 : i32
    %c0_i32_1 = arith.constant 0 : i32
    return %c0_i32, %c0_i32_0 : i32, i32
  }
  func.func @transform_15(%arg0: i32, %arg1: i32) -> (i32, i32) {
    %c0_i32 = arith.constant 0 : i32
    %c0_i32_0 = arith.constant 0 : i32
    %c0_i32_1 = arith.constant 0 : i32
    return %c0_i32, %c0_i32_0 : i32, i32
  }
  func.func @transform_16(%arg0: i32, %arg1: i32) -> (i32, i32) {
    %c0_i32 = arith.constant 0 : i32
    %c0_i32_0 = arith.constant 0 : i32
    %c0_i32_1 = arith.constant 0 : i32
    return %c0_i32, %c0_i32_0 : i32, i32
  }
  func.func @transform_17(%arg0: i32, %arg1: i32) -> (i32, i32, i32) {
    %c0_i32 = arith.constant 0 : i32
    %c0_i32_0 = arith.constant 0 : i32
    %c0_i32_1 = arith.constant 0 : i32
    return %arg0, %c0_i32, %c0_i32_0 : i32, i32, i32
  }
}

</mosaic_0001>

<bundles_post_ra>
// kernel: tpu_custom_call.1
= control target key start
LH: loop header
LB: loop body
LE: loop exit
PB: predicated region body
PF: predicated region fallthrough
CT: control target
= control target key end

     0   :  { %s3673_s0 = inlined_call_operand.vmem [shape: f32[2,8,32], index: 0, kind: input, shape index: {}]   ;;  %s3674_s1 = inlined_call_operand.vmem [shape: f32[8,8], index: 1, kind: input, shape index: {}]   ;;  %s3675_s2 = inlined_call_operand.vmem [shape: f32[2,1,32], index: 2, kind: input, shape index: {}]   ;;  %s3676_s3 = inlined_call_operand.vmem [shape: f32[2,1,32], index: 3, kind: input, shape index: {}]   ;;  %s3677_s4 = inlined_call_operand.vmem [shape: bf16[2,32,96], index: 4, kind: input, shape index: {}]   ;;  %s3678_s5 = inlined_call_operand.vmem [shape: f32[2,1,96], index: 5, kind: input, shape index: {}]   ;;  %s3679_s6 = inlined_call_operand.vmem [shape: bf16[2,32,32], index: 6, kind: input, shape index: {}]   ;;  %s3680_s7 = inlined_call_operand.vmem [shape: f32[2,1,32], index: 7, kind: input, shape index: {}]   ;;  %s3681_s8 = inlined_call_operand.vmem [shape: f32[2,1,32], index: 8, kind: input, shape index: {}]   ;;  %s3682_s9 = inlined_call_operand.vmem [shape: f32[2,1,32], index: 9, kind: input, shape index: {}]   ;;  %s3683_s10 = inlined_call_operand.vmem [shape: bf16[2,32,128], index: 10, kind: input, shape index: {}]   ;;  %s3684_s11 = inlined_call_operand.vmem [shape: f32[2,1,128], index: 11, kind: input, shape index: {}]   ;;  %s3685_s12 = inlined_call_operand.vmem [shape: bf16[2,128,32], index: 12, kind: input, shape index: {}]   ;;  %s3686_s13 = inlined_call_operand.vmem [shape: f32[2,1,32], index: 13, kind: input, shape index: {}]   ;;  %s3687_s14 = inlined_call_operand.vmem [shape: f32[1,32], index: 14, kind: input, shape index: {}]   ;;  %s3688_s15 = inlined_call_operand.vmem [shape: f32[1,32], index: 15, kind: input, shape index: {}]   ;;  %s3689_s16 = inlined_call_operand.vmem [shape: bf16[32,128], index: 16, kind: input, shape index: {}]   ;;  %s3690_s17 = inlined_call_operand.hbm [shape: f32[2,8,128], index: 17, kind: output, shape index: {}]  }
   0x1   :  { %3707 = sst [smem:[#allocation19_spill]] %s3673_s0 }
   0x2   :  { %3708 = sst [smem:[#allocation20_spill]] %s3674_s1 }
   0x3   :  { %3709 = sst [smem:[#allocation21_spill]] %s3676_s3 }
   0x4   :  { %3710 = sst [smem:[#allocation22_spill]] %s3677_s4 }
   0x5   :  { %3711 = sst [smem:[#allocation23_spill]] %s3679_s6 }
   0x6   :  { %3712 = sst [smem:[#allocation24_spill]] %s3687_s14 }
   0x7   :  { %3713 = sst [smem:[#allocation25_spill]] %s3688_s15 }
   0x8   :  { %3714 = sst [smem:[#allocation26_spill]] %s3689_s16 }
   0x9   :  { %3715 = sst [smem:[#allocation27_spill]] %s3690_s17 }
   0xa   :  { %22 = vsyncpa [#allocation4], 0 }
   0xb   :  { %24 = vsyncpa [#allocation4 + $0x1], 0  ;;  %s3215_s24 = smov 0   ;;  %s3217_s25 = smov 0  }
   0xc   :  { %s3219_s26 = smov 0   ;;  %s3221_s27 = smov 0  }
   0xd   :  { %s3223_s28 = smov 0   ;;  %s3225_s29 = smov 0  }
   0xe   :  { %s3227_s0 = smov 0   ;;  %s3229_s30 = smov 0  }
   0xf LB: > { %3716 = sst [smem:[#allocation6_spill]] %s3080_s24  ;;  %s2685_s18 = sadd.s32 4294967295, %s3108_s30   ;;  %s3108_s30 = sphi %s3229_s30, %s30_s30   ;;  %s3104_s0 = sphi %s3227_s0, %s3762_s0   ;;  %s3100_s29 = sphi %s3225_s29, %s3761_s29   ;;  %s3096_s28 = sphi %s3223_s28, %s3760_s28   ;;  %s3092_s27 = sphi %s3221_s27, %s3759_s27   ;;  %s3088_s26 = sphi %s3219_s26, %s3758_s26   ;;  %s3084_s25 = sphi %s3217_s25, %s3757_s25   ;;  %s3080_s24 = sphi %s3215_s24, %s3756_s24  }
  0x10   : > { %3717 = sst [smem:[#allocation7_spill]] %s3084_s25  ;;  %s2686_s19 = sadd.s32 4294967294, %s3108_s30  }
  0x11   : > { %3718 = sst [smem:[#allocation8_spill]] %s3088_s26  ;;  %s39_s1 = sadd.s32 1, %s3100_s29 }
  0x12   : > { %3719 = sst [smem:[#allocation9_spill]] %s3092_s27  ;;  %p40_p0 = scmp.ge.s32.totalorder %s39_s1, 2 }
  0x13   : > { %3720 = sst [smem:[#allocation10_spill]] %s3096_s28  ;;  %s42_s20 = sadd.s32 1, %s3104_s0 }
  0x14   : > { %3721 = sst [smem:[#allocation11_spill]] %s3100_s29  ;;  %p481_p1 = scmp.ne.s32.totalorder %s3088_s26, %s3084_s25 }
  0x15   : > { %3722 = sst [smem:[#allocation12_spill]] %s3104_s0  ;;  %p482_p2 = scmp.eq.s32.totalorder %s2685_s18, 3 }
  0x16   : > { %3723 = sst [smem:[#allocation13_spill]] %s3108_s30  ;;  %s3764_s1 = smov (%p40_p0, %s39_s1), 0 }
  0x17   : > { %3724 = sst [smem:[#allocation14_spill]] %s3764_s1  ;;  %s3766_s20 = smov (!%p40_p0, %s42_s20), %s3104_s0 }
  0x18   : > { %p3264_p3 = por %p482_p2, %p481_p1  ;;  %p487_p4 = scmp.ne.s32.totalorder %s3084_s25, %s3080_s24 }
  0x19   : > { %p44_p5 = scmp.ge.s32.totalorder %s3766_s20, 2  ;;  %p488_p6 = scmp.eq.s32.totalorder %s2686_s19, 3 }
  0x1a   : > { %s3725_s21 = scalar_select %p3264_p3, 1, 0 }
  0x1b   : > { %p2689_p7 = scmp.ge.s32.totalorder %s3108_s30, 1  ;;  %p605_p8 = scmp.lt.s32.totalorder %s3108_s30, 5 }
  0x1c   : > { %3726 = sst [smem:[#allocation15_spill]] %s3725_s21  ;;  %s3768_s20 = smov (%p44_p5, %s3766_s20), 0 }
  0x1d   : > { %3727 = sst [smem:[#allocation16_spill]] %s3768_s20  ;;  %p3274_p9 = por %p488_p6, %p487_p4 }
  0x1e   : > { %p606_p10 = pnand %p2689_p7, %p605_p8  ;;  %s468_s23 = ssub.s32 %s3104_s0, %s3768_s20 }
  0x1f   : > { %s3728_s22 = scalar_select %p3274_p9, 1, 0 }
  0x20   : > { %s471_s18 = sadd.s32 1, %s3088_s26  ;;  %p469_p11 = scmp.eq.s32.totalorder %s468_s23, 0 }
  0x21   : > { %3729 = sst [smem:[#allocation17_spill]] %s3728_s22  ;;  %609 = sbr.rel (%p606_p10) target bundleno = 3290 (0xcda), region = 88 }
  0x22   : > { %s3282_s1 = scalar_select %p469_p11, %s3088_s26, %s471_s18  }
  0x23   : > { %s3696_s19 = sand.u32 (!%p606_p10), 1, %s3084_s25   ;;  %p700_p12 = scmp.lt.s32.totalorder (!%p606_p10), %s3096_s28, 1 }
  0x24   : > { %3730 = sst [smem:[#allocation18_spill]] %s3282_s1  ;;  %s3288_s29 = sshll.u32 (!%p606_p10), %s3696_s19, 3 }
  0x25   : > { %p704_p13 = scmp.lt.s32.totalorder (!%p606_p10), %s3092_s27, 1  ;;  %s3731_s0 = sld [smem:[#allocation19_spill]] (!%p606_p10) }
  0x26   : > { %s3733_s4 = sld [smem:[#allocation22_spill]] (!%p606_p10)  ;;  %s3734_s6 = sld [smem:[#allocation23_spill]] (!%p606_p10) }
  0x27   : > { %s699_s14 = scalar_lea.vmem (!%p606_p10), [#allocation3], %s3288_s29  ;;  %s3735_s15 = sld [smem:[#allocation9_spill]] (!%p606_p10) }
  0x28   : > { %s701_s22 = scalar_select %p700_p12, %s3096_s28, 1 }
  0x29   : > { %s3293_s24 = scalar_select %p704_p13, %s3092_s27, 1 }
  0x2a   : > { %s2691_s23 = sshll.u32 %s701_s22, 3 }
  0x2b   : > { %s703_s19 = scalar_lea.vmem %s3731_s0, %s2691_s23  ;;  %s2756_s28 = sshll.u32 %s3293_s24, 4 }
  0x2c   : > { %s3310_s16 = scalar_lea.vmem %s3733_s4, %s2756_s28  ;;  %s3319_s23 = scalar_lea.vmem %s3734_s6, %s2756_s28 }
  0x2d   : > { %s731_s4 = scalar_lea.vmem %s3682_s9, %s3293_s24  ;;  %s3336_s22 = scalar_lea.vmem %s3683_s10, %s2756_s28 }
  0x2e   : > { %s739_s20 = scalar_lea.vmem %s3684_s11, %s3293_s24  ;;  %s2759_s6 = sshll.u32 %s3293_s24, 6 }
  0x2f   : > { %s747_s17 = scalar_lea.vmem %s3686_s13, %s3293_s24  ;;  %s3350_s30 = scalar_lea.vmem %s3685_s12, %s2759_s6 }
  0x30   : > { %p2700_p0 = scmp.ne.s32.totalorder %s3735_s15, 0 }
  0x31   : > { %v753_v0 = vld [vmem:[%s703_s19] sm:$0xff] (!%p2700_p0)  ;;  %vm754_vm0 = vcmask (!%p2700_p0), 261120  }
  0x32   : > { %752 = sbr.rel (%p2700_p0) target bundleno = 57 (0x39), region = 92  ;;  %755 = vst.msk [vmem:[#allocation2] sm:$0xff] (!%p2700_p0), %vm754_vm0, %v753_v0 }
  0x39 PF: > { %v3354_v1 = vld [vmem:[#allocation2] sm:$0xff]  ;;  %vm759_vm1 = vcmask 261120   ;;  %v3110_v9 = vmov 0.0   ;;  %vm3111_vm2 = vmmov 0   ;;  %v2975_v10 = vld [vmem:[%s3310_s16 + $0x8] sm:$0xff]   ;;  %s3737_s27 = sld [smem:[#allocation21_spill]]  ;;  %s3739_s1 = scalar_lea.vmem %s3678_s5, %s3293_s24  ;;  %v871_v36 = vlaneseq }
  0x3a   : > { %v760_v2 = vsel %vm759_vm1, %v3354_v1, 0.0  ;;  %v2974_v8 = vld [vmem:[%s3310_s16] sm:$0xff]   ;;  %2797 = vmatprep.subr.bf16.mxu0 %v3110_v9  ;;  %2801 = vmatprep.mubr.msk.bf16.mxu0 %vm3111_vm2, %v3110_v9  ;;  %s3736_s16 = scalar_lea.vmem %s3675_s2, %s3293_s24  ;;  %s3112_s25 = smov 104   ;;  %v3116_v34 = vmov 1983009808   ;;  %vm1306_vm3 = vcmask 64512  }
  0x3b   : > { %761 = vadd.xlane.f32.xlu0 %v760_v2  ;;  %2798 = vmatpush3.bf16.msra.mxu0 %v2974_v8  ;;  %v2701_v15 = vld [vmem:[%s3736_s16] ss:$0 sm:$0xff]  ;;  %s3113_s21 = smov 120   ;;  %s3114_s15 = smov 112   ;;  %v869_v35 = vunpack.c.l.s4 %v3116_v34  ;;  %v3117_v37 = vmov 1934713408  }
  0x3c   : > { %2810 = vmatprep.subr.mxu1 %v3110_v9  ;;  %2799 = vmatprep.subr.bf16.mxu0 %v3110_v9  ;;  %v2703_v21 = vld [vmem:[%s3739_s1] ss:$0 sm:$0xff]  ;;  %s3115_s3 = smov 96   ;;  %v901_v38 = vunpack.c.l.s4 %v3117_v37  ;;  %v872_v41 = vshrl.u32 %v871_v36, 7  ;;  %s3740_s28 = sld [smem:[#allocation20_spill]]  ;;  %vm2096_vm4 = vcmask 130048  }
  0x3d   : > { %2812 = vmatprep.mubr.msk.f32.mxu1 %vm3111_vm2, %v3110_v9  ;;  %v870_v40 = vunpack.c.0.s8 %v869_v35  ;;  %s3118_s19 = smov 64   ;;  %vm2098_vm5 = vcmask 195584   ;;  %s3741_s1 = scalar_lea.vmem %s3680_s7, %s3293_s24 }
  0x3e   : > { %v902_v42 = vunpack.c.0.s8 %v901_v38  ;;  %s3743_s16 = sld [smem:[#allocation9_spill]] }
  0x3f   : > { %2800 = vmatpush3.bf16.msra.mxu0 %v2975_v10  ;;  %s3738_s18 = scalar_lea.vmem %s3737_s27, %s3293_s24  ;;  %v3404_v46 = vsub.s32 %v870_v40, %v872_v41  ;;  %s3120_s27 = smov 8  }
  0x40   : > { %2805 = vmatprep.subr.mxu0 %v3110_v9  ;;  %v2702_v17 = vld [vmem:[%s3738_s18] ss:$0 sm:$0xff]  ;;  %v3406_v49 = vsub.s32 %v902_v42, %v872_v41  ;;  %s3121_s18 = smov 24  }
  0x44   : > { %p2746_p1 = scmp.ne.s32.totalorder %s3743_s16, 1 }
  0x45   : > { %vm3123_vm6 = vmmov (!%p2746_p1), 0   ;;  %s3746_s26 = sld [smem:[#allocation24_spill]] (!%p2746_p1) }
  0xc8   : > { %v762_v3 = vpop.xlane.xlu0 %761 }
  0xc9   : > { %v764_v4 = vmul.f32 0.03125, %v762_v3 }
  0xcb   : > { %v765_v5 = vsub.f32 %v3354_v1, %v764_v4 }
  0xcd   : > { %v766_v6 = vmul.f32 %v765_v5, %v765_v5 }
  0xcf   : > { %v767_v7 = vsel %vm759_vm1, %v766_v6, 0.0 }
  0xd0   : > { %768 = vadd.xlane.f32.xlu0 %v767_v7 }
 0x15d   : > { %v769_v11 = vpop.xlane.xlu0 %768 }
 0x15e   : > { %v770_v12 = vmul.f32 0.03125, %v769_v11 }
 0x160   : > { %v771_v13 = vadd.f32 1e-05, %v770_v12 }
 0x162   : > { %2988 = vrsqrt.f32 %v771_v13 }
 0x16c   : > { %v2989_v14 = vpop.eup %2988 }
 0x16d   : > { %v773_v16 = vmul.f32 %v2989_v14, %v765_v5 }
 0x16f   : > { %v780_v18 = vmul.f32 %v2701_v15, %v773_v16 }
 0x171   : > { %v787_v19 = vadd.f32 %v2702_v17, %v780_v18 }
 0x173   : > { %v788_v20 = vpack.c.bf16 %v787_v19, %v787_v19 }
 0x175   : > { %2802 = vmatmul.mubr.msk.bf16.vlgmr.msra.gmra.mrb[0].mxu0 %vm759_vm1, %v788_v20 }
 0x176   : > { %2807 = vmatprep.mubr.msk.f32.mxu0 %vm3111_vm2, %v3110_v9 }
 0x248   : > { %v849_v22 = vpop.f32.mrb[0].mxu0 }
 0x249   : > { %v3388_v23 = vadd.f32 %v2703_v21, %v849_v22  ;;  %v2803_v24 = vpop.f32.mrb[1].mxu0 }
 0x24a   : > { %v852_v25 = vpop.f32.mrb[2].mxu0 }
 0x24b   : > { %1007 = vrot.lane.b32.xlu0 %v3388_v23, %s3112_s25  ;;  %1003 = vrot.lane.b32.xlu1 %v3388_v23, %s3113_s21  ;;  %v2804_v26 = vpop.f32.mrb[3].mxu0  ;;  %v855_v27 = vmul.f32 0.35355338, %v3388_v23 }
 0x24f   : > { %1005 = vrot.lane.b32.xlu1 %v3388_v23, %s3114_s15  ;;  %863 = vrot.lane.b32.xlu0 %v855_v27, %s3112_s25 }
 0x253   : > { %1009 = vrot.lane.b32.xlu1 %v3388_v23, %s3115_s3 }
 0x257   : > { %857 = vrot.lane.b32.xlu1 %v855_v27, %s3113_s21  ;;  %s3747_s21 = sld [smem:[#allocation25_spill]] (!%p2746_p1) }
 0x2bd   : > { %v3395_v28 = vpop.permute.xlu1 %1003  ;;  %v3401_v30 = vpop.permute.xlu0 %1007 }
 0x2be   : > { %1011 = vrot.lane.b32.xlu1 %v3395_v28, %s3115_s3 }
 0x2c1   : > { %v3398_v29 = vpop.permute.xlu1 %1005  ;;  %v864_v50 = vpop.permute.xlu0 %863 }
 0x2c2   : > { %1013 = vrot.lane.b32.xlu1 %v3398_v29, %s3115_s3 }
 0x2c5   : > { %v1010_v31 = vpop.permute.xlu1 %1009 }
 0x2c6   : > { %1015 = vrot.lane.b32.xlu1 %v3401_v30, %s3115_s3 }
 0x2c9   : > { %v858_v32 = vpop.permute.xlu1 %857 }
 0x2ca   : > { %860 = vrot.lane.b32.xlu1 %v855_v27, %s3114_s15  ;;  %v882_v55 = vcombine.low %v858_v32, %v864_v50  ;;  %v883_v56 = vcombine.high %v858_v32, %v864_v50  ;;  %s3742_s15 = scalar_lea.vmem %s3681_s8, %s3293_s24 }
 0x2cc   : > { %v890_v5 = vrot.slane %v882_v55, %v3404_v46  ;;  %v897_v6 = vrot.slane %v883_v56, %v3404_v46 }
 0x330   : > { %v1012_v33 = vpop.permute.xlu1 %1011 }
 0x334   : > { %v1014_v39 = vpop.permute.xlu1 %1013 }
 0x335   : > { %v1021_v43 = vcombine.low %v1010_v31, %v1014_v39  ;;  %v1022_v44 = vcombine.high %v1010_v31, %v1014_v39 }
 0x337   : > { %v1029_v51 = vrot.slane %v1021_v43, %v3404_v46  ;;  %v1036_v52 = vrot.slane %v1022_v44, %v3404_v46 }
 0x338   : > { %v1016_v45 = vpop.permute.xlu1 %1015 }
 0x339   : > { %v1037_v47 = vcombine.low %v1012_v33, %v1016_v45  ;;  %v1038_v48 = vcombine.high %v1012_v33, %v1016_v45 }
 0x33b   : > { %v1045_v53 = vrot.slane %v1037_v47, %v3404_v46  ;;  %v1052_v54 = vrot.slane %v1038_v48, %v3404_v46 }
 0x33c   : > { %v861_v57 = vpop.permute.xlu1 %860 }
 0x33d   : > { %v1053_v58 = vcombine.low %v1029_v51, %v1045_v53  ;;  %v1054_v59 = vcombine.high %v1029_v51, %v1045_v53  ;;  %v1069_v60 = vcombine.low %v1036_v52, %v1052_v54  ;;  %v1070_v61 = vcombine.high %v1036_v52, %v1052_v54 }
 0x33e   : > { %v866_v62 = vcombine.low %v855_v27, %v861_v57  ;;  %v867_v63 = vcombine.high %v855_v27, %v861_v57 }
 0x33f   : > { %v1061_v0 = vrot.slane %v1053_v58, %v3406_v49  ;;  %v1068_v2 = vrot.slane %v1054_v59, %v3406_v49  ;;  %v1077_v3 = vrot.slane %v1069_v60, %v3406_v49  ;;  %v1084_v4 = vrot.slane %v1070_v61, %v3406_v49 }
 0x340   : > { %v874_v7 = vrot.slane %v866_v62, %v3404_v46  ;;  %v881_v8 = vrot.slane %v867_v63, %v3404_v46 }
 0x341   : > { %v1089_v10 = vcombine.low %v1061_v0, %v1068_v2  ;;  %v2709_v11 = vcombine.high %v1061_v0, %v1068_v2  ;;  %v1105_v12 = vcombine.low %v1077_v3, %v1084_v4  ;;  %v2710_v13 = vcombine.high %v1077_v3, %v1084_v4  ;;  %v1305_v0 = vld [vmem:[%s3740_s28] sm:$0xff]  ;;  %s3744_s28 = sld [smem:[#allocation26_spill]] (!%p2746_p1) }
 0x342   : > { %v898_v14 = vcombine.low %v874_v7, %v890_v5  ;;  %v899_v15 = vcombine.high %v874_v7, %v890_v5  ;;  %v914_v16 = vcombine.low %v881_v8, %v897_v6  ;;  %v915_v17 = vcombine.high %v881_v8, %v897_v6 }
 0x343   : > { %v1096_v18 = vrot.slane %v1089_v10, %v3404_v46  ;;  %v1104_v19 = vrot.slane %v2709_v11, %v3404_v46  ;;  %v1112_v20 = vrot.slane %v1105_v12, %v3404_v46  ;;  %v1120_v21 = vrot.slane %v2710_v13, %v3404_v46 }
 0x344   : > { %v906_v22 = vrot.slane %v898_v14, %v3406_v49  ;;  %v913_v24 = vrot.slane %v899_v15, %v3406_v49  ;;  %v922_v25 = vrot.slane %v914_v16, %v3406_v49  ;;  %v929_v26 = vrot.slane %v915_v17, %v3406_v49 }
 0x345   : > { %v1121_v27 = vcombine.low %v1096_v18, %v1104_v19  ;;  %v1137_v31 = vcombine.low %v1112_v20, %v1120_v21  ;;  %v1122_v36 = vcombine.high %v1096_v18, %v1104_v19  ;;  %v1138_v37 = vcombine.high %v1112_v20, %v1120_v21 }
 0x346   : > { %v934_v32 = vcombine.low %v906_v22, %v913_v24  ;;  %v2707_v33 = vcombine.high %v906_v22, %v913_v24  ;;  %v950_v34 = vcombine.low %v922_v25, %v929_v26  ;;  %v2708_v35 = vcombine.high %v922_v25, %v929_v26 }
 0x347   : > { %v1129_v38 = vrot.slane %v1121_v27, %v3406_v49  ;;  %v1145_v39 = vrot.slane %v1137_v31, %v3406_v49  ;;  %v1136_v52 = vrot.slane %v1122_v36, %v3406_v49  ;;  %v1152_v53 = vrot.slane %v1138_v37, %v3406_v49 }
 0x348   : > { %v941_v40 = vrot.slane %v934_v32, %v3404_v46  ;;  %v949_v41 = vrot.slane %v2707_v33, %v3404_v46  ;;  %v957_v42 = vrot.slane %v950_v34, %v3404_v46  ;;  %v965_v43 = vrot.slane %v2708_v35, %v3404_v46 }
 0x349   : > { %v1153_v44 = vcombine.low %v1129_v38, %v1145_v39  ;;  %v1154_v45 = vcombine.high %v1129_v38, %v1145_v39  ;;  %v1155_v60 = vcombine.low %v1136_v52, %v1152_v53  ;;  %v1156_v61 = vcombine.high %v1136_v52, %v1152_v53 }
 0x34a   : > { %v966_v47 = vcombine.low %v941_v40, %v949_v41  ;;  %v967_v48 = vcombine.high %v941_v40, %v949_v41  ;;  %v982_v50 = vcombine.low %v957_v42, %v965_v43  ;;  %v983_v51 = vcombine.high %v957_v42, %v965_v43 }
 0x34b   : > { %2806 = vmatpush3.xpose.msk.msra.mxu0 %vm1306_vm3, %v1153_v44  ;;  %2811 = vmatpush3.xpose.msk.msra.mxu1 %vm1306_vm3, %v1154_v45 }
 0x34c   : > { %2815 = vmatprep.subr.mxu1 %v3110_v9  ;;  %2820 = vmatprep.subr.mxu0 %v3110_v9  ;;  %v974_v54 = vrot.slane %v966_v47, %v3406_v49  ;;  %v990_v55 = vrot.slane %v982_v50, %v3406_v49  ;;  %v981_v58 = vrot.slane %v967_v48, %v3406_v49 }
 0x34d   : > { %v997_v59 = vrot.slane %v983_v51, %v3406_v49 }
 0x34e   : > { %v998_v56 = vcombine.low %v974_v54, %v990_v55  ;;  %v999_v57 = vcombine.high %v974_v54, %v990_v55 }
 0x34f   : > { %v1000_v62 = vcombine.low %v981_v58, %v997_v59  ;;  %v1001_v63 = vcombine.high %v981_v58, %v997_v59 }
 0x350   : > { %2808 = vmatmul.mubr.msk.f32.vlgmr.msra.gmra.mrb[4].mxu0 %vm1306_vm3, %v998_v56  ;;  %2813 = vmatmul.mubr.msk.f32.vlgmr.msra.gmra.mrb[0].mxu1 %vm1306_vm3, %v999_v57 }
 0x351   : > { %2816 = vmatpush3.xpose.msk.msra.mxu1 %vm1306_vm3, %v1155_v60  ;;  %2821 = vmatpush3.xpose.msk.msra.mxu0 %vm1306_vm3, %v1156_v61 }
 0x352   : > { %2817 = vmatprep.mubr.msk.f32.mxu1 %vm3111_vm2, %v3110_v9  ;;  %2822 = vmatprep.mubr.msk.f32.mxu0 %vm3111_vm2, %v3110_v9 }
 0x353   : > { %2825 = vmatprep.subr.mxu1 %v3110_v9  ;;  %2830 = vmatprep.subr.mxu0 %v3110_v9 }
 0x354   : > { %2818 = vmatmul.mubr.msk.f32.vlgmr.msra.gmra.mrb[2].mxu1 %vm1306_vm3, %v1000_v62  ;;  %2823 = vmatmul.mubr.msk.f32.vlgmr.msra.gmra.mrb[6].mxu0 %vm1306_vm3, %v1001_v63 }
 0x355   : > { %2827 = vmatprep.mubr.msk.f32.mxu1 %vm3111_vm2, %v3110_v9  ;;  %2832 = vmatprep.mubr.msk.f32.mxu0 %vm3111_vm2, %v3110_v9 }
 0x423   : > { %v1379_v2 = vpop.f32.mrb[4].mxu0  ;;  %v1455_v3 = vpop.f32.mrb[0].mxu1 }
 0x424   : > { %v1380_v4 = vadd.f32 %v1379_v2, %v1305_v0  ;;  %v1456_v5 = vadd.f32 %v1455_v3, %v1305_v0  ;;  %v2809_v6 = vpop.f32.mrb[5].mxu0  ;;  %v2814_v7 = vpop.f32.mrb[1].mxu1 }
 0x426   : > { %v1614_v8 = vsel %vm1306_vm3, %v1456_v5, -inf  ;;  %v1611_v10 = vsel %vm1306_vm3, %v1380_v4, -inf }
 0x427   : > { %1615 = vmax.xlane.f32.xlu0 %v1614_v8  ;;  %v1531_v11 = vpop.f32.mrb[2].mxu1  ;;  %1612 = vmax.xlane.f32.xlu1 %v1611_v10  ;;  %v1607_v12 = vpop.f32.mrb[6].mxu0 }
 0x428   : > { %v1532_v13 = vadd.f32 %v1531_v11, %v1305_v0  ;;  %v1608_v14 = vadd.f32 %v1607_v12, %v1305_v0  ;;  %v2819_v15 = vpop.f32.mrb[3].mxu1  ;;  %v2824_v16 = vpop.f32.mrb[7].mxu0 }
 0x42a   : > { %v1617_v17 = vsel %vm1306_vm3, %v1532_v13, -inf  ;;  %v1620_v18 = vsel %vm1306_vm3, %v1608_v14, -inf }
 0x42b   : > { %1618 = vmax.xlane.f32.xlu0 %v1617_v17  ;;  %1621 = vmax.xlane.f32.xlu1 %v1620_v18 }
 0x43c   : > { %1159 = vrot.lane.b32.xlu1 %v3395_v28, %s3118_s19 }
 0x441   : > { %1157 = vrot.lane.b32.xlu0 %v3388_v23, %s3118_s19 }
 0x4b4   : > { %v1616_v19 = vpop.xlane.xlu0 %1615  ;;  %v1613_v20 = vpop.xlane.xlu1 %1612 }
 0x4b5   : > { %v1624_v21 = vsub.f32 %v1456_v5, %v1616_v19  ;;  %v1623_v22 = vsub.f32 %v1380_v4, %v1613_v20 }
 0x4b7   : > { %v1629_v24 = vmul.f32 1.442695, %v1624_v21  ;;  %v1627_v25 = vmul.f32 1.442695, %v1623_v22 }
 0x4b8   : > { %v1619_v26 = vpop.xlane.xlu0 %1618  ;;  %v1622_v27 = vpop.xlane.xlu1 %1621 }
 0x4b9   : > { %2990 = vpow2.f32 %v1629_v24  ;;  %v1625_v31 = vsub.f32 %v1532_v13, %v1619_v26  ;;  %v1626_v32 = vsub.f32 %v1608_v14, %v1622_v27 }
 0x4ba   : > { %2992 = vpow2.f32 %v1627_v25 }
 0x4bb   : > { %v1631_v33 = vmul.f32 1.442695, %v1625_v31  ;;  %v1633_v34 = vmul.f32 1.442695, %v1626_v32 }
 0x4bc   : > { %v1160_v41 = vpop.permute.xlu1 %1159  ;;  %v1158_v42 = vpop.permute.xlu0 %1157 }
 0x4bd   : > { %2994 = vpow2.f32 %v1631_v33 }
 0x4be   : > { %2996 = vpow2.f32 %v1633_v34 }
 0x4c3   : > { %v3471_v28 = vpop.eup %2990 }
 0x4c4   : > { %v2993_v35 = vpop.eup %2992  ;;  %v1638_v23 = vsel %vm1306_vm3, %v3471_v28, 0.0 }
 0x4c5   : > { %v1635_v36 = vsel %vm1306_vm3, %v2993_v35, 0.0  ;;  %1639 = vadd.xlane.f32.xlu1 %v1638_v23 }
 0x4c6   : > { %1636 = vadd.xlane.f32.xlu0 %v1635_v36 }
 0x4c7   : > { %v3476_v37 = vpop.eup %2994 }
 0x4c8   : > { %v3478_v38 = vpop.eup %2996  ;;  %v1641_v39 = vsel %vm1306_vm3, %v3476_v37, 0.0 }
 0x4c9   : > { %v1644_v40 = vsel %vm1306_vm3, %v3478_v38, 0.0 }
 0x4ca   : > { %1642 = vadd.xlane.f32.xlu0 %v1641_v39  ;;  %1645 = vadd.xlane.f32.xlu1 %v1644_v40 }
 0x4db   : > { %1161 = vrot.lane.b32.xlu1 %v3398_v29, %s3118_s19 }
 0x4e0   : > { %1163 = vrot.lane.b32.xlu0 %v3401_v30, %s3118_s19  ;;  %s3745_s19 = smov (!%p2746_p1), %s3744_s28 }
 0x552   : > { %v1640_v43 = vpop.xlane.xlu1 %1639 }
 0x553   : > { %v1637_v44 = vpop.xlane.xlu0 %1636  ;;  %2998 = vrcp.f32 %v1640_v43 }
 0x554   : > { %3000 = vrcp.f32 %v1637_v44 }
 0x557   : > { %v1643_v45 = vpop.xlane.xlu0 %1642  ;;  %v1646_v47 = vpop.xlane.xlu1 %1645 }
 0x558   : > { %3002 = vrcp.f32 %v1643_v45 }
 0x559   : > { %3004 = vrcp.f32 %v1646_v47 }
 0x55b   : > { %v1164_v48 = vpop.permute.xlu0 %1163  ;;  %v1162_v50 = vpop.permute.xlu1 %1161 }
 0x55c   : > { %v1185_v51 = vcombine.low %v1160_v41, %v1164_v48  ;;  %v1186_v52 = vcombine.high %v1160_v41, %v1164_v48  ;;  %v1169_v53 = vcombine.low %v1158_v42, %v1162_v50  ;;  %v1170_v54 = vcombine.high %v1158_v42, %v1162_v50 }
 0x55d   : > { %v2999_v15 = vpop.eup %2998 }
 0x55e   : > { %v1193_v55 = vrot.slane %v1185_v51, %v3404_v46  ;;  %v1200_v56 = vrot.slane %v1186_v52, %v3404_v46  ;;  %v1177_v29 = vrot.slane %v1169_v53, %v3404_v46  ;;  %v1184_v30 = vrot.slane %v1170_v54, %v3404_v46  ;;  %v3001_v17 = vpop.eup %3000 }
 0x55f   : > { %v1651_v25 = vmul.f32 %v3001_v17, %v2993_v35  ;;  %v1652_v26 = vmul.f32 %v2999_v15, %v3471_v28 }
 0x560   : > { %v1201_v57 = vcombine.low %v1177_v29, %v1193_v55  ;;  %v1202_v58 = vcombine.high %v1177_v29, %v1193_v55  ;;  %v1217_v59 = vcombine.low %v1184_v30, %v1200_v56  ;;  %v1218_v60 = vcombine.high %v1184_v30, %v1200_v56  ;;  %v2976_v55 = vld [vmem:[%s3319_s23] sm:$0xff]  }
 0x562   : > { %v1209_v61 = vrot.slane %v1201_v57, %v3406_v49  ;;  %v1216_v62 = vrot.slane %v1202_v58, %v3406_v49  ;;  %v1225_v63 = vrot.slane %v1217_v59, %v3406_v49  ;;  %v1232_v0 = vrot.slane %v1218_v60, %v3406_v49  ;;  %v3003_v24 = vpop.eup %3002 }
 0x563   : > { %v3005_v27 = vpop.eup %3004  ;;  %v1653_v33 = vmul.f32 %v3003_v24, %v3476_v37 }
 0x564   : > { %v1237_v2 = vcombine.low %v1209_v61, %v1216_v62  ;;  %v2711_v3 = vcombine.high %v1209_v61, %v1216_v62  ;;  %v1253_v4 = vcombine.low %v1225_v63, %v1232_v0  ;;  %v2712_v5 = vcombine.high %v1225_v63, %v1232_v0  ;;  %v2977_v62 = vld [vmem:[%s3319_s23 + $0x8] sm:$0xff]   ;;  %s3119_s23 = smov 16  }
 0x565   : > { %v1654_v34 = vmul.f32 %v3005_v27, %v3478_v38 }
 0x566   : > { %v1244_v6 = vrot.slane %v1237_v2, %v3404_v46  ;;  %v1252_v7 = vrot.slane %v2711_v3, %v3404_v46  ;;  %v1260_v8 = vrot.slane %v1253_v4, %v3404_v46  ;;  %v1268_v10 = vrot.slane %v2712_v5, %v3404_v46 }
 0x568   : > { %v1269_v11 = vcombine.low %v1244_v6, %v1252_v7  ;;  %v1270_v12 = vcombine.high %v1244_v6, %v1252_v7  ;;  %v1285_v13 = vcombine.low %v1260_v8, %v1268_v10  ;;  %v1286_v14 = vcombine.high %v1260_v8, %v1268_v10 }
 0x56a   : > { %v1277_v16 = vrot.slane %v1269_v11, %v3406_v49  ;;  %v1293_v18 = vrot.slane %v1285_v13, %v3406_v49  ;;  %v1284_v19 = vrot.slane %v1270_v12, %v3406_v49  ;;  %v1300_v20 = vrot.slane %v1286_v14, %v3406_v49 }
 0x56c   : > { %v1301_v21 = vcombine.low %v1277_v16, %v1293_v18  ;;  %v1302_v22 = vcombine.high %v1277_v16, %v1293_v18  ;;  %v1303_v31 = vcombine.low %v1284_v19, %v1300_v20  ;;  %v1304_v32 = vcombine.high %v1284_v19, %v1300_v20 }
 0x56e   : > { %2826 = vmatpush3.msra.mxu1 %v1301_v21  ;;  %2831 = vmatpush3.msra.mxu0 %v1302_v22  ;;  %v2727_v22 = vld [vmem:[%s3741_s1] ss:$0 sm:$0xff] }
 0x56f   : > { %2828 = vmatmul.mubr.msk.f32.vlgmr.msra.gmra.mrb[4].mxu1 %vm1306_vm3, %v1651_v25  ;;  %2833 = vmatmul.mubr.msk.f32.vlgmr.msra.gmra.mrb[8].mxu0 %vm1306_vm3, %v1652_v26 }
 0x570   : > { %2835 = vmatprep.subr.mxu1 %v3110_v9  ;;  %2840 = vmatprep.subr.mxu0 %v3110_v9 }
 0x571   : > { %2836 = vmatpush3.msra.mxu1 %v1303_v31  ;;  %2841 = vmatpush3.msra.mxu0 %v1304_v32 }
 0x572   : > { %2837 = vmatprep.mubr.msk.f32.mxu1 %vm3111_vm2, %v3110_v9  ;;  %2842 = vmatprep.mubr.msk.f32.mxu0 %vm3111_vm2, %v3110_v9 }
 0x573   : > { %2838 = vmatmul.mubr.msk.f32.vlgmr.msra.gmra.mrb[6].mxu1 %vm1306_vm3, %v1653_v33  ;;  %2843 = vmatmul.mubr.msk.f32.vlgmr.msra.gmra.mrb[10].mxu0 %vm1306_vm3, %v1654_v34 }
 0x574   : > { %2845 = vmatprep.subr.bf16.mxu0 %v3110_v9  ;;  %2849 = vmatprep.mubr.msk.bf16.mxu0 %vm3111_vm2, %v3110_v9 }
 0x575   : > { %2861 = vmatprep.subr.bf16.mxu1 %v3110_v9  ;;  %2877 = vmatprep.mubr.msk.bf16.mxu1 %vm3111_vm2, %v3110_v9 }
 0x576   : > { %2846 = vmatpush3.bf16.msra.mxu0 %v2976_v55  ;;  %v2985_v55 = vld [vmem:[%s3350_s30 + $0x28] sm:$0xff]  }
 0x577   : > { %2847 = vmatprep.subr.bf16.mxu0 %v3110_v9 }
 0x57a   : > { %2848 = vmatpush3.bf16.msra.mxu0 %v2977_v62 }
 0x57b   : > { %2853 = vmatprep.subr.bf16.mxu0 %v3110_v9 }
 0x642   : > { %v1724_v28 = vpop.f32.mrb[4].mxu1  ;;  %v1797_v35 = vpop.f32.mrb[8].mxu0 }
 0x643   : > { %v2829_v23 = vpop.f32.mrb[5].mxu1  ;;  %v2834_v36 = vpop.f32.mrb[9].mxu0 }
 0x646   : > { %v1870_v37 = vpop.f32.mrb[6].mxu1  ;;  %v1943_v38 = vpop.f32.mrb[10].mxu0 }
 0x647   : > { %v1947_v39 = vcombine.low %v1724_v28, %v1870_v37  ;;  %v1948_v40 = vcombine.high %v1724_v28, %v1870_v37  ;;  %v1963_v41 = vcombine.low %v1797_v35, %v1943_v38  ;;  %v1964_v42 = vcombine.high %v1797_v35, %v1943_v38  ;;  %v2839_v43 = vpop.f32.mrb[7].mxu1  ;;  %v2844_v44 = vpop.f32.mrb[11].mxu0  ;;  %v2978_v37 = vld [vmem:[%s3336_s22] sm:$0xff]   ;;  %v2979_v38 = vld [vmem:[%s3336_s22 + $0x8] sm:$0xff]  }
 0x648   : > { %v2731_v43 = vld [vmem:[%s3742_s15] ss:$0 sm:$0xff] }
 0x649   : > { %v1955_v45 = vrot.slane %v1947_v39, %v3404_v46  ;;  %v1962_v47 = vrot.slane %v1948_v40, %v3404_v46  ;;  %v1971_v48 = vrot.slane %v1963_v41, %v3404_v46  ;;  %v1978_v50 = vrot.slane %v1964_v42, %v3404_v46 }
 0x64b   : > { %v1979_v51 = vcombine.low %v1955_v45, %v1971_v48  ;;  %v1980_v52 = vcombine.high %v1955_v45, %v1971_v48  ;;  %v1995_v53 = vcombine.low %v1962_v47, %v1978_v50  ;;  %v1996_v54 = vcombine.high %v1962_v47, %v1978_v50  ;;  %v2732_v45 = vld [vmem:[%s731_s4] ss:$0 sm:$0xff] }
 0x64d   : > { %v1987_v56 = vrot.slane %v1979_v51, %v3406_v49  ;;  %v1994_v29 = vrot.slane %v1980_v52, %v3406_v49  ;;  %v2003_v30 = vrot.slane %v1995_v53, %v3406_v49  ;;  %v2010_v57 = vrot.slane %v1996_v54, %v3406_v49  ;;  %v2981_v51 = vld [vmem:[%s3350_s30 + $0x8] sm:$0xff]   ;;  %v2982_v52 = vld [vmem:[%s3350_s30 + $0x10] sm:$0xff]   ;;  %v2983_v53 = vld [vmem:[%s3350_s30 + $0x18] sm:$0xff]  }
 0x64e   : > { %v2984_v54 = vld [vmem:[%s3350_s30 + $0x20] sm:$0xff]  }
 0x64f   : > { %v2015_v58 = vcombine.low %v1987_v56, %v1994_v29  ;;  %v2725_v59 = vcombine.high %v1987_v56, %v1994_v29  ;;  %v2031_v60 = vcombine.low %v2003_v30, %v2010_v57  ;;  %v2726_v61 = vcombine.high %v2003_v30, %v2010_v57  ;;  %v2986_v56 = vld [vmem:[%s3350_s30 + $0x30] sm:$0xff]   ;;  %v2987_v29 = vld [vmem:[%s3350_s30 + $0x38] sm:$0xff]   ;;  %v2733_v30 = vld [vmem:[%s739_s20] ss:$0 sm:$0xff] }
 0x651   : > { %v2022_v63 = vrot.slane %v2015_v58, %v3404_v46  ;;  %v2030_v0 = vrot.slane %v2725_v59, %v3404_v46  ;;  %v2038_v2 = vrot.slane %v2031_v60, %v3404_v46  ;;  %v2046_v3 = vrot.slane %v2726_v61, %v3404_v46 }
 0x653   : > { %v2048_v4 = vcombine.high %v2022_v63, %v2030_v0  ;;  %v2064_v5 = vcombine.high %v2038_v2, %v2046_v3  ;;  %v2047_v6 = vcombine.low %v2022_v63, %v2030_v0  ;;  %v2063_v7 = vcombine.low %v2038_v2, %v2046_v3 }
 0x655   : > { %v2062_v8 = vrot.slane %v2048_v4, %v3406_v49  ;;  %v2078_v10 = vrot.slane %v2064_v5, %v3406_v49  ;;  %v2055_v11 = vrot.slane %v2047_v6, %v3406_v49  ;;  %v2071_v12 = vrot.slane %v2063_v7, %v3406_v49 }
 0x657   : > { %v2081_v13 = vcombine.low %v2062_v8, %v2078_v10  ;;  %v2080_v14 = vcombine.high %v2055_v11, %v2071_v12  ;;  %v2082_v15 = vcombine.high %v2062_v8, %v2078_v10  ;;  %v2079_v16 = vcombine.low %v2055_v11, %v2071_v12  ;;  %v2737_v8 = vld [vmem:[%s747_s17] ss:$0 sm:$0xff] }
 0x659   : > { %2088 = vrot.lane.b32.xlu0 %v2081_v13, %s3119_s23  ;;  %2084 = vrot.lane.b32.xlu1 %v2080_v14, %s3120_s27 }
 0x65d   : > { %2092 = vrot.lane.b32.xlu1 %v2082_v15, %s3121_s18 }
 0x6cb   : > { %v2085_v46 = vpop.permute.xlu1 %2084  ;;  %v2089_v17 = vpop.permute.xlu0 %2088 }
 0x6cc   : > { %v2095_v18 = vsel %vm1306_vm3, %v2079_v16, %v2085_v46 }
 0x6cd   : > { %v2097_v20 = vsel %vm2096_vm4, %v2095_v18, %v2089_v17 }
 0x6cf   : > { %v2093_v19 = vpop.permute.xlu1 %2092 }
 0x6d0   : > { %v2099_v49 = vsel %vm2098_vm5, %v2097_v20, %v2093_v19 }
 0x6d1   : > { %v2100_v21 = vpack.c.bf16 %v2099_v49, %v2099_v49  ;;  %v3010_v49 = vld [vmem:[%s3744_s28] sm:$0xff] (!%p2746_p1)  }
 0x6d3   : > { %2850 = vmatmul.mubr.msk.bf16.vlgmr.msra.gmra.mrb[12].mxu0 %vm759_vm1, %v2100_v21  ;;  %v3122_v21 = vmov (!%p2746_p1), 0.0  }
 0x6d4   : > { %2857 = vmatprep.mubr.msk.bf16.mxu0 %vm3111_vm2, %v3110_v9  ;;  %2854 = vmatpush3.bf16.msra.mxu0 %v2978_v37 }
 0x6d5   : > { %2855 = vmatprep.subr.bf16.mxu0 %v3110_v9 }
 0x6d8   : > { %2856 = vmatpush3.bf16.msra.mxu0 %v2979_v38 }
 0x6d9   : > { %2881 = vmatprep.subr.bf16.mxu0 (!%p2746_p1), %v3122_v21 }
 0x7a6   : > { %v2161_v24 = vpop.f32.mrb[12].mxu0 }
 0x7a7   : > { %v2162_v25 = vadd.f32 %v2727_v22, %v2161_v24  ;;  %v2851_v26 = vpop.f32.mrb[13].mxu0  ;;  %v3011_v22 = vld [vmem:[%s3745_s19 + $0x8] sm:$0xff] (!%p2746_p1)  }
 0x7a8   : > { %v2164_v27 = vpop.f32.mrb[14].mxu0 }
 0x7a9   : > { %v3553_v31 = vadd.f32 %v2162_v25, %v3354_v1  ;;  %v2852_v32 = vpop.f32.mrb[15].mxu0  ;;  %v2980_v1 = vld [vmem:[%s3350_s30] sm:$0xff]  }
 0x7aa   : > { %2862 = vmatpush3.bf16.msra.mxu1 %v2980_v1 }
 0x7ab   : > { %v2170_v33 = vsel %vm759_vm1, %v3553_v31, 0.0  ;;  %2863 = vmatprep.subr.bf16.mxu1 %v3110_v9 }
 0x7ac   : > { %2171 = vadd.xlane.f32.xlu0 %v2170_v33  ;;  %v2748_v33 = vld [vmem:[%s3747_s21] ss:$0 sm:$0xff] (!%p2746_p1) }
 0x7ae   : > { %2864 = vmatpush3.bf16.msra.mxu1 %v2981_v51 }
 0x7af   : > { %2865 = vmatprep.subr.bf16.mxu1 %v3110_v9 }
 0x7b2   : > { %2866 = vmatpush3.bf16.msra.mxu1 %v2982_v52 }
 0x7b3   : > { %2867 = vmatprep.subr.bf16.mxu1 %v3110_v9 }
 0x7b6   : > { %2868 = vmatpush3.bf16.msra.mxu1 %v2983_v53 }
 0x7b7   : > { %2869 = vmatprep.subr.bf16.mxu1 %v3110_v9 }
 0x7ba   : > { %2870 = vmatpush3.bf16.msra.mxu1 %v2984_v54 }
 0x7bb   : > { %2871 = vmatprep.subr.bf16.mxu1 %v3110_v9 }
 0x7be   : > { %2872 = vmatpush3.bf16.msra.mxu1 %v2985_v55 }
 0x7bf   : > { %2873 = vmatprep.subr.bf16.mxu1 %v3110_v9 }
 0x7c2   : > { %2874 = vmatpush3.bf16.msra.mxu1 %v2986_v56 }
 0x7c3   : > { %2875 = vmatprep.subr.bf16.mxu1 %v3110_v9 }
 0x7c6   : > { %2876 = vmatpush3.bf16.msra.mxu1 %v2987_v29 }
 0x839   : > { %v2172_v34 = vpop.xlane.xlu0 %2171 }
 0x83a   : > { %v2173_v28 = vmul.f32 0.03125, %v2172_v34 }
 0x83c   : > { %v2174_v35 = vsub.f32 %v3553_v31, %v2173_v28 }
 0x83e   : > { %v2175_v23 = vmul.f32 %v2174_v35, %v2174_v35 }
 0x840   : > { %v2176_v36 = vsel %vm759_vm1, %v2175_v23, 0.0 }
 0x841   : > { %2177 = vadd.xlane.f32.xlu1 %v2176_v36 }
 0x8ce   : > { %v2178_v39 = vpop.xlane.xlu1 %2177 }
 0x8cf   : > { %v2179_v40 = vmul.f32 0.03125, %v2178_v39 }
 0x8d1   : > { %v2180_v41 = vadd.f32 1e-05, %v2179_v40 }
 0x8d3   : > { %3006 = vrsqrt.f32 %v2180_v41 }
 0x8dd   : > { %v3007_v42 = vpop.eup %3006 }
 0x8de   : > { %v2182_v44 = vmul.f32 %v3007_v42, %v2174_v35 }
 0x8e0   : > { %v2189_v47 = vmul.f32 %v2731_v43, %v2182_v44 }
 0x8e2   : > { %v2196_v48 = vadd.f32 %v2732_v45, %v2189_v47 }
 0x8e4   : > { %v2197_v50 = vpack.c.bf16 %v2196_v48, %v2196_v48 }
 0x8e6   : > { %2858 = vmatmul.mubr.msk.bf16.vlgmr.msra.gmra.mrb[16].mxu0 %vm759_vm1, %v2197_v50 }
 0x8e7   : > { %2885 = vmatprep.mubr.msk.bf16.mxu0 (!%p2746_p1), %vm3123_vm6, %v3122_v21  ;;  %2882 = vmatpush3.bf16.msra.mxu0 (!%p2746_p1), %v3010_v49 }
 0x8e8   : > { %2883 = vmatprep.subr.bf16.mxu0 (!%p2746_p1), %v3122_v21 }
 0x8eb   : > { %2884 = vmatpush3.bf16.msra.mxu0 (!%p2746_p1), %v3011_v22 }
 0x9b9   : > { %v2258_v57 = vpop.f32.mrb[16].mxu0 }
 0x9ba   : > { %v2259_v58 = vadd.f32 %v2733_v30, %v2258_v57  ;;  %v2859_v59 = vpop.f32.mrb[17].mxu0 }
 0x9bb   : > { %v2261_v60 = vpop.f32.mrb[18].mxu0 }
 0x9bc   : > { %v2265_v61 = vmul.f32 %v2259_v58, %v2259_v58  ;;  %v2860_v62 = vpop.f32.mrb[19].mxu0  ;;  %v2264_v9 = vmul.f32 0.5, %v2259_v58 }
 0x9be   : > { %v2266_v63 = vmul.f32 %v2265_v61, %v2259_v58 }
 0x9c0   : > { %v2267_v0 = vmul.f32 0.044715, %v2266_v63 }
 0x9c2   : > { %v2268_v2 = vadd.f32 %v2267_v0, %v2259_v58 }
 0x9c4   : > { %v2269_v3 = vmul.f32 0.7978846, %v2268_v2 }
 0x9c6   : > { %3008 = vtanh.f32 %v2269_v3 }
 0x9d0   : > { %v3009_v4 = vpop.eup %3008 }
 0x9d1   : > { %v2271_v5 = vadd.f32 1.0, %v3009_v4 }
 0x9d3   : > { %v2272_v6 = vmul.f32 %v2271_v5, %v2264_v9 }
 0x9d5   : > { %v2273_v7 = vpack.c.bf16 %v2272_v6, %v2272_v6 }
 0x9d7   : > { %2878 = vmatmul.mubr.bf16.vlgmr.msra.gmra.mrb[8].mxu1 %v2273_v7 }
 0xaa9   : > { %2390 = sbr.rel (%p2746_p1) target bundleno = 3265 (0xcc1), region = 96 }
 0xaaa   : > { %v2379_v10 = vpop.f32.mrb[8].mxu1 }
 0xaab   : > { %v2380_v11 = vadd.f32 %v2737_v8, %v2379_v10  ;;  %v2879_v12 = vpop.f32.mrb[9].mxu1 }
 0xaac   : > { %v2382_v13 = vpop.f32.mrb[10].mxu1 }
 0xaad   : > { %v2385_v14 = vadd.f32 %v2380_v11, %v3553_v31  ;;  %v2880_v15 = vpop.f32.mrb[11].mxu1  ;;  %v2747_v31 = vld [vmem:[%s3746_s26] ss:$0 sm:$0xff] (!%p2746_p1) }
 0xaaf   : > { %2386 = vst.msk [vmem:[#allocation2] sm:$0xff] %vm759_vm1, %v2385_v14  ;;  %v2393_v16 = vsel (!%p2746_p1), %vm759_vm1, %v2385_v14, 0.0 }
 0xab0   : > { %2394 = vadd.xlane.f32.xlu0 %v2393_v16 }
 0xb3d   : > { %v2395_v46 = vpop.xlane.xlu0 %2394 }
 0xb3e   : > { %v2396_v17 = vmul.f32 0.03125, %v2395_v46 }
 0xb40   : > { %v2397_v18 = vsub.f32 %v2385_v14, %v2396_v17 }
 0xb42   : > { %v2398_v19 = vmul.f32 %v2397_v18, %v2397_v18 }
 0xb44   : > { %v2399_v20 = vsel %vm759_vm1, %v2398_v19, 0.0 }
 0xb45   : > { %2400 = vadd.xlane.f32.xlu0 %v2399_v20 }
 0xbd2   : > { %v2401_v24 = vpop.xlane.xlu0 %2400 }
 0xbd3   : > { %v2402_v25 = vmul.f32 0.03125, %v2401_v24 }
 0xbd5   : > { %v2403_v26 = vadd.f32 1e-05, %v2402_v25 }
 0xbd7   : > { %3012 = vrsqrt.f32 %v2403_v26 }
 0xbe1   : > { %v3013_v27 = vpop.eup %3012 }
 0xbe2   : > { %v2405_v32 = vmul.f32 %v3013_v27, %v2397_v18 }
 0xbe4   : > { %v2412_v34 = vmul.f32 %v2747_v31, %v2405_v32 }
 0xbe6   : > { %v2419_v28 = vadd.f32 %v2748_v33, %v2412_v34 }
 0xbe8   : > { %v2420_v35 = vpack.c.bf16 %v2419_v28, %v2419_v28 }
 0xbea   : > { %2886 = vmatmul.mubr.msk.bf16.vlgmr.msra.gmra.mrb[0].mxu0 %vm759_vm1, %v2420_v35 }
 0xcbd   : > { %v2474_v23 = vpop.f32.mrb[0].mxu0 }
 0xcbe   : > { %2480 = vst [vmem:[%s699_s14] sm:$0xff] %v2474_v23  ;;  %v2887_v36 = vpop.f32.mrb[1].mxu0 }
 0xcbf   : > { %v2477_v37 = vpop.f32.mrb[2].mxu0 }
 0xcc0   : > { %v2888_v38 = vpop.f32.mrb[3].mxu0 }
 0xcc1 PF: > { %s3748_s15 = sld [smem:[#allocation10_spill]]  ;;  %s3749_s22 = sld [smem:[#allocation7_spill]] }
 0xcc2   : > { %s3751_s20 = sld [smem:[#allocation27_spill]]  ;;  %s2495_s24 = sshll.u32 %s699_s14, 4  ;;  %s2496_s24 = int_to_ptr.vmem [resolvable:$true] %s2495_s24 }
 0xcc3   : > { %s3014_s23 = scalar_lea.vmem %s2496_s24, 128  ;;  %s3124_s27 = smov [#allocation3]  }
 0xcc4   : > { %p3015_p2 = scmp.ne.s32.totalorder %s2496_s24, %s3014_s23  ;;  %s3018_s18 = sshll.u32 %s3124_s27, 4  ;;  %s3019_s18 = int_to_ptr.vmem [resolvable:$false] %s3018_s18 }
 0xcc5   : > { %s3020_s0 = scalar_lea.vmem %s3019_s18, 256  ;;  %p3021_p6 = scmp.lt.s32.totalorder %s2496_s24, %s3019_s18 }
 0xcc6   : > { %p3016_p4 = pnand %p3015_p2, %p3264_p3  ;;  %p3022_p7 = scmp.lt.s32.totalorder %s3020_s0, %s3014_s23 }
 0xcc7   : > { %s2753_s4 = sshll.u32 %s3748_s15, 7  ;;  %s3752_s17 = sand.u32 1, %s3749_s22  }
 0xcc8   : > { %s3622_s16 = scalar_lea.hbm %s3751_s20, %s2753_s4  ;;  %s2482_s28 = scalar_lea.sflag [#allocation4], %s3752_s17 }
 0xcc9   : > { %p3017_p5 = pneg %p3016_p4  ;;  %p3023_p8 = por %p3022_p7, %p3021_p6 }
 0xccb   : > { %p3024_p10 = pnand %p3023_p8, %p3017_p5 }
 0xccd   : > { %3027 = shalt.err (!%p3024_p10)
}
 0xcce   : > { %s3028_s29 = scalar_lea.hbm %s3622_s16, 128  ;;  %s3032_s1 = scalar_lea.hbm %s3751_s20, 256 }
 0xccf   : > { %p3029_p11 = scmp.ne.s32.totalorder %s3622_s16, %s3028_s29  ;;  %p3033_p0 = scmp.lt.u32.totalorder %s3622_s16, %s3751_s20 }
 0xcd0   : > { %p3034_p1 = scmp.lt.u32.totalorder %s3032_s1, %s3028_s29  ;;  %p3036_p4 = scmp.lt.u32.totalorder %s3028_s29, %s3622_s16 }
 0xcd1   : > { %p3030_p12 = pnand %p3029_p11, %p3264_p3 }
 0xcd2   : > { %p3035_p2 = por %p3034_p1, %p3033_p0 }
 0xcd3   : > { %p3031_p13 = pneg %p3030_p12 }
 0xcd4   : > { %p3037_p5 = por %p3036_p4, %p3035_p2 }
 0xcd6   : > { %p3038_p6 = pnand %p3037_p5, %p3031_p13 }
 0xcd8   : > { %3041 = shalt.err (!%p3038_p6)
}
 0xcd9   : > { %2889 = dma.vmem_to_hbm [thread:$0]  (%p3264_p3), %s2496_s24, 128, %s3622_s16, %s2482_s28  }
 0xcda PF: > { %s3753_s15 = sld [smem:[#allocation13_spill]]  ;;  %s3754_s22 = sld [smem:[#allocation6_spill]] }
 0xce0   : > { %p2895_p7 = scmp.ge.s32.totalorder %s3753_s15, 2  ;;  %s2507_s6 = sand.u32 1, %s3754_s22  }
 0xce1   : > { %s2508_s30 = scalar_lea.sflag [#allocation4], %s2507_s6 }
 0xce2   : > { %p2892_p8 = pnand %p2895_p7, %p3274_p9 }
 0xce4   : > { %3075 = dma.done.wait (!%p2892_p8), %s2508_s30, 128  }
 0xce5   : > { %3077 = vsyncadd (!%p2892_p8), %s2508_s30, 4294967168  ;;  %s30_s30 = sadd.s32 1, %s3753_s15   ;;  %s3756_s24 = sld [smem:[#allocation7_spill]] }
 0xce6   : > { %p27_p10 = scmp.ge.s32.totalorder %s30_s30, 6   ;;  %s3757_s25 = sld [smem:[#allocation8_spill]] }
 0xce7   : > { %s3758_s26 = sld [smem:[#allocation18_spill]]  ;;  %s3759_s27 = sld [smem:[#allocation11_spill]] }
 0xce8   : > { %s3760_s28 = sld [smem:[#allocation12_spill]]  ;;  %s3761_s29 = sld [smem:[#allocation14_spill]] }
 0xce9   : > { %s3762_s0 = sld [smem:[#allocation16_spill]]  ;;  %29 = sbr.rel (!%p27_p10) target bundleno = 15 (0xf), region = 167 }
 0xcf0   :  { %2513 = vsyncpa [#allocation4], 1 }
 0xcf1   :  { %2515 = vsyncpa [#allocation4 + $0x1], 1 }

</bundles_post_ra>
